<compile_context>
chip_gen: v7x
topology: tpu7x:2x2x1
jax: 0.10.0
libtpu: 0.0.40
codegen_flags: <defaults>
</compile_context>

<pallas_src>
import functools

import jax
import jax.numpy as jnp
from jax import lax
from jax.experimental import pallas as pl
from jax.experimental.pallas import tpu as pltpu


def _cdiv(a, b):
    return (a + b - 1) // b


def _round_up(a, b):
    return _cdiv(a, b) * b


def position_decoder_kernel(
    # scalar-prefetch (SMEM): per-node-tile first edge-block index / #blocks
    bs_ref, nb_ref,
    # per-edge packed features [diff(3) | sf_src(D) | sf_dst(D)] and dst index
    feat_ref, dst_ref,
    # distance MLP params (1 -> Hd -> Hd -> 1); db2 folded into mb0
    dw0_ref, db0_ref, dw1_ref, db1_ref, dw2_ref,
    # message MLP params; first-layer weight padded with 3 zero rows so the
    # packed feature block feeds a single matmul; dist column weight separate
    mw0_ref, mw0x_ref, mb0_ref, mw1_ref, mb1_ref, mw2_ref, mb2_ref,
    out_ref,
    *, n_tile,
):
    n = pl.program_id(0)   # node tile (parallel)
    e = pl.program_id(1)   # edge block within this node tile's range (arbitrary)

    @pl.when(e == 0)
    def _zero():
        out_ref[...] = jnp.zeros_like(out_ref)

    # Skip padded grid steps (this node tile owns fewer edge blocks than the max).
    @pl.when(e < nb_ref[n])
    def _accumulate():
        feat = feat_ref[...]                                   # (E_tile, 3+2D)
        diff = feat[:, 0:3]                                    # (E_tile, 3)

        # torch.pairwise_distance adds eps=1e-6 to the difference before the norm
        d = jnp.sqrt(jnp.sum((diff + 1e-6) ** 2, axis=-1, keepdims=True))   # (E_tile, 1)
        # F.normalize: v / max(||v||, 1e-12)  ==  v * rsqrt(max(||v||^2, 1e-24))
        nrm2 = jnp.sum(diff * diff, axis=-1, keepdims=True)
        vecs = diff * lax.rsqrt(jnp.maximum(nrm2, 1e-24))      # (E_tile, 3)

        # ---- distance MLP: relu(Linear(1,Hd)) -> relu(Linear(Hd,Hd)) -> Linear(Hd,1) ----
        h = jnp.maximum(d * dw0_ref[...] + db0_ref[...], 0.0)                 # (E_tile, Hd)
        h = jnp.maximum(
            jnp.dot(h, dw1_ref[...], preferred_element_type=jnp.float32) + db1_ref[...],
            0.0,
        )
        dists = jnp.sum(h * dw2_ref[...], axis=-1, keepdims=True)             # (E_tile, 1)
        # (db2 was folded into mb0 in the wrapper: mb0_eff = mb0 + db2 * mw0x)

        # ---- message MLP on concat([sf_src, sf_dst, dists]) ----
        pre = (
            jnp.dot(feat, mw0_ref[...], preferred_element_type=jnp.float32)   # diff rows hit zero weights
            + dists * mw0x_ref[...]
            + mb0_ref[...]
        )                                                                     # (E_tile, Hm)
        h2 = jnp.maximum(pre, 0.0)
        h2 = jnp.maximum(
            jnp.dot(h2, mw1_ref[...], preferred_element_type=jnp.float32) + mb1_ref[...],
            0.0,
        )
        msg = jnp.sum(h2 * mw2_ref[...], axis=-1, keepdims=True) + mb2_ref[0, 0]   # (E_tile, 1)

        x = msg * vecs                                                        # (E_tile, 3)

        # ---- scatter-sum restricted to this node tile: (N_tile, E_tile) one-hot ----
        local = dst_ref[...] - n * n_tile                                     # (1, E_tile)
        node_iota = lax.broadcasted_iota(jnp.int32, (n_tile, x.shape[0]), 0)
        onehot = (node_iota == local).astype(jnp.float32)   # out-of-range / padded edges never match
        out_ref[...] += jnp.dot(onehot, x, preferred_element_type=jnp.float32)


def position_decoder(edge_index, scalar_features, pos, params, *, e_tile=512, n_tile=256):
    """Wrapper: gather + sort-by-dst (glue), then one edge/node-tiled Pallas kernel."""
    src = edge_index[0].astype(jnp.int32)
    dst = edge_index[1].astype(jnp.int32)
    N, D = scalar_features.shape
    E = int(src.shape[0])

    e_tile = min(e_tile, _round_up(E, 128))
    n_tile = min(n_tile, _round_up(N, 8))
    assert e_tile % 128 == 0 and n_tile % 8 == 0

    NT = _cdiv(N, n_tile)
    N_pad = NT * n_tile
    EB = _cdiv(E, e_tile)
    E_pad = EB * e_tile

    # Sort edges by destination so every node tile owns a contiguous edge range.
    order = jnp.argsort(dst)
    src_s = src[order]
    dst_s = dst[order]

    # TODO(synk): fold the per-edge pos/sf gather into the kernel (manual DMA gather)
    # to avoid the HBM round-trip of these gathered arrays (matters most on v5e).
    diff = pos[src_s] - pos[dst_s]                                            # (E, 3)
    feat = jnp.concatenate(
        [diff, scalar_features[src_s], scalar_features[dst_s]], axis=-1
    )                                                                         # (E, 3+2D)
    F = feat.shape[-1]

    feat = jnp.pad(feat, ((0, E_pad - E), (0, 0)))
    dst_p = jnp.pad(dst_s, (0, E_pad - E), constant_values=N_pad)  # sentinel: never matched
    dst2d = dst_p.reshape(1, E_pad)

    # Contiguous [start, end) edge range per node tile -> first block index + block count.
    bounds = jnp.arange(NT + 1, dtype=jnp.int32) * n_tile
    cuts = jnp.searchsorted(dst_p, bounds, side="left").astype(jnp.int32)     # (NT+1,)
    starts, ends = cuts[:-1], cuts[1:]
    has_edges = ends > starts
    blk_start = jnp.where(has_edges, starts // e_tile, 0).astype(jnp.int32)
    blk_count = jnp.where(
        has_edges, (ends - 1) // e_tile - starts // e_tile + 1, 0
    ).astype(jnp.int32)
    # Grid extents must be static: host-sync the max block count (eager wrapper).
    # Under jit, pass a static per-node-tile degree bound here instead.
    g2 = max(int(jnp.max(blk_count)), 1)

    # Parameter folding: pad first message-layer weight with zero rows for the diff
    # columns of the packed feature, and fold db2 into the message bias via mw0x.
    Hm = params["mw0s"].shape[-1]
    mw0 = jnp.concatenate(
        [jnp.zeros((3, Hm), jnp.float32), params["mw0s"], params["mw0d"]], axis=0
    )                                                                         # (3+2D, Hm)
    mb0 = params["mb0"] + params["db2"] * params["mw0x"]                      # (1, Hm)

    def edge_map(n, e, bs, nb):
        return (jnp.minimum(bs[n] + e, EB - 1), 0)

    def dst_map(n, e, bs, nb):
        return (0, jnp.minimum(bs[n] + e, EB - 1))

    def wspec(arr):
        return pl.BlockSpec(arr.shape, lambda n, e, bs, nb: (0, 0))

    weights = (
        params["dw0"], params["db0"], params["dw1"], params["db1"], params["dw2"],
        mw0, params["mw0x"], mb0, params["mw1"], params["mb1"], params["mw2"],
    )

    grid_spec = pltpu.PrefetchScalarGridSpec(
        num_scalar_prefetch=2,
        grid=(NT, g2),
        in_specs=[
            pl.BlockSpec((e_tile, F), edge_map),
            pl.BlockSpec((1, e_tile), dst_map),
        ]
        + [wspec(w) for w in weights]
        + [pl.BlockSpec(memory_space=pltpu.MemorySpace.SMEM)],                # mb2 scalar
        out_specs=pl.BlockSpec((n_tile, 3), lambda n, e, bs, nb: (n, 0)),
    )

    out = pl.pallas_call(
        functools.partial(position_decoder_kernel, n_tile=n_tile),
        out_shape=jax.ShapeDtypeStruct((N_pad, 3), jnp.float32),
        grid_spec=grid_spec,
        compiler_params=pltpu.CompilerParams(
            dimension_semantics=("parallel", "arbitrary"),
            vmem_limit_bytes=32 * 1024 * 1024,
        ),
    )(blk_start, blk_count, feat, dst2d, *weights, params["mb2"])

    return out[:N]


def reference(edge_index, scalar_features, pos, params):
    """Pure-JAX reference of the PyTorch forward (eval mode)."""
    src, dst = edge_index[0], edge_index[1]
    diff = pos[src] - pos[dst]
    d = jnp.sqrt(jnp.sum((diff + 1e-6) ** 2, axis=-1, keepdims=True))
    vecs = diff / jnp.maximum(
        jnp.sqrt(jnp.sum(diff * diff, axis=-1, keepdims=True)), 1e-12
    )
    h = jnp.maximum(d * params["dw0"] + params["db0"], 0.0)
    h = jnp.maximum(h @ params["dw1"] + params["db1"], 0.0)
    dists = jnp.sum(h * params["dw2"], axis=-1, keepdims=True) + params["db2"]
    pre = (
        scalar_features[src] @ params["mw0s"]
        + scalar_features[dst] @ params["mw0d"]
        + dists * params["mw0x"]
        + params["mb0"]
    )
    h = jnp.maximum(pre, 0.0)
    h = jnp.maximum(h @ params["mw1"] + params["mb1"], 0.0)
    msg = jnp.sum(h * params["mw2"], axis=-1, keepdims=True) + params["mb2"]
    x = msg * vecs
    return jax.ops.segment_sum(x, dst, num_segments=pos.shape[0])


def init_params(key, feat_dim, msg_hidden, dist_hidden):
    """Deterministic PyTorch-Linear-style init: U(-1/sqrt(fan_in), 1/sqrt(fan_in))."""
    ks = list(jax.random.split(key, 16))

    def lin(k, fan_in, shape):
        bound = 1.0 / jnp.sqrt(jnp.maximum(fan_in, 1)).astype(jnp.float32)
        return jax.random.uniform(k, shape, jnp.float32, -bound, bound)

    D, Hm, Hd = feat_dim, msg_hidden, dist_hidden
    msg_in = 2 * D + 1
    return dict(
        # distance MLP: 1 -> Hd -> Hd -> 1
        dw0=lin(ks[0], 1, (1, Hd)),   db0=lin(ks[1], 1, (1, Hd)),
        dw1=lin(ks[2], Hd, (Hd, Hd)), db1=lin(ks[3], Hd, (1, Hd)),
        dw2=lin(ks[4], Hd, (1, Hd)),  db2=lin(ks[5], Hd, (1, 1)),
        # message MLP: (2D+1) -> Hm -> Hm -> 1, first weight split by input source
        mw0s=lin(ks[6], msg_in, (D, Hm)),
        mw0d=lin(ks[7], msg_in, (D, Hm)),
        mw0x=lin(ks[8], msg_in, (1, Hm)),
        mb0=lin(ks[9], msg_in, (1, Hm)),
        mw1=lin(ks[10], Hm, (Hm, Hm)), mb1=lin(ks[11], Hm, (1, Hm)),
        mw2=lin(ks[12], Hm, (1, Hm)),  mb2=lin(ks[13], Hm, (1, 1)),
    )


if __name__ == "__main__":
    # Small synthetic graph: N nodes, E edges, D scalar features per node.
    # Tiles chosen small so the test exercises multiple node tiles (grid dim 0),
    # multiple edge blocks (grid dim 1) and the ragged per-tile block counts.
    N, E, D = 20, 200, 8
    MSG_HIDDEN, DIST_HIDDEN = 32, 16   # num_message_layers=2, num_distance_layers=2

    key = jax.random.PRNGKey(0)
    k_sf, k_pos, k_src, k_dst, k_par = jax.random.split(key, 5)

    scalar_features = jax.random.normal(k_sf, (N, D), jnp.float32)
    pos = jax.random.normal(k_pos, (N, 3), jnp.float32)
    edge_index = jnp.stack(
        [
            jax.random.randint(k_src, (E,), 0, N),
            jax.random.randint(k_dst, (E,), 0, N),
        ],
        axis=0,
    ).astype(jnp.int32)

    params = init_params(k_par, D, MSG_HIDDEN, DIST_HIDDEN)

    out = position_decoder(edge_index, scalar_features, pos, params,
                           e_tile=128, n_tile=8)
    out = jax.block_until_ready(out)

    ref = reference(edge_index, scalar_features, pos, params)
    assert out.shape == (N, 3)
    assert jnp.allclose(out, ref, rtol=1e-4, atol=1e-5), "mismatch vs JAX reference"

    print("KERNEL_OK")
</pallas_src>

<mosaic_0001>
module attributes {stable_mosaic.version = 11 : i64} {
  func.func @position_decoder_kernel(%arg0: i32, %arg1: i32, %arg2: memref<3xi32, #tpu.memory_space<smem>>, %arg3: memref<3xi32, #tpu.memory_space<smem>>, %arg4: memref<128x19xf32, #tpu.memory_space<vmem>>, %arg5: memref<1x128xi32, #tpu.memory_space<vmem>>, %arg6: memref<1x16xf32, #tpu.memory_space<vmem>>, %arg7: memref<1x16xf32, #tpu.memory_space<vmem>>, %arg8: memref<16x16xf32, #tpu.memory_space<vmem>>, %arg9: memref<1x16xf32, #tpu.memory_space<vmem>>, %arg10: memref<1x16xf32, #tpu.memory_space<vmem>>, %arg11: memref<19x32xf32, #tpu.memory_space<vmem>>, %arg12: memref<1x32xf32, #tpu.memory_space<vmem>>, %arg13: memref<1x32xf32, #tpu.memory_space<vmem>>, %arg14: memref<32x32xf32, #tpu.memory_space<vmem>>, %arg15: memref<1x32xf32, #tpu.memory_space<vmem>>, %arg16: memref<1x32xf32, #tpu.memory_space<vmem>>, %arg17: memref<1x1xf32, #tpu.memory_space<smem>>, %arg18: memref<8x3xf32, #tpu.memory_space<vmem>>) attributes {dimension_semantics = [#tpu.dimension_semantics<parallel>, #tpu.dimension_semantics<arbitrary>], iteration_bounds = array<i64: 3, 2>, scalar_prefetch = 2 : i64, scratch_operands = 0 : i64, tpu.core_type = #tpu.core_type<tc>, window_params = [{transform_indices = @transform_0, window_bounds = array<i64: 128, 19>}, {transform_indices = @transform_1, window_bounds = array<i64: 1, 128>}, {pipeline_mode = #tpu.pipeline_mode<synchronous>, transform_indices = @transform_2, window_bounds = array<i64: 1, 16>}, {pipeline_mode = #tpu.pipeline_mode<synchronous>, transform_indices = @transform_3, window_bounds = array<i64: 1, 16>}, {pipeline_mode = #tpu.pipeline_mode<synchronous>, transform_indices = @transform_4, window_bounds = array<i64: 16, 16>}, {pipeline_mode = #tpu.pipeline_mode<synchronous>, transform_indices = @transform_5, window_bounds = array<i64: 1, 16>}, {pipeline_mode = #tpu.pipeline_mode<synchronous>, transform_indices = @transform_6, window_bounds = array<i64: 1, 16>}, {pipeline_mode = #tpu.pipeline_mode<synchronous>, transform_indices = @transform_7, window_bounds = array<i64: 19, 32>}, {pipeline_mode = #tpu.pipeline_mode<synchronous>, transform_indices = @transform_8, window_bounds = array<i64: 1, 32>}, {pipeline_mode = #tpu.pipeline_mode<synchronous>, transform_indices = @transform_9, window_bounds = array<i64: 1, 32>}, {pipeline_mode = #tpu.pipeline_mode<synchronous>, transform_indices = @transform_10, window_bounds = array<i64: 32, 32>}, {pipeline_mode = #tpu.pipeline_mode<synchronous>, transform_indices = @transform_11, window_bounds = array<i64: 1, 32>}, {pipeline_mode = #tpu.pipeline_mode<synchronous>, transform_indices = @transform_12, window_bounds = array<i64: 1, 32>}, {transform_indices = @transform_13, window_bounds = array<i64: 1, 1>}, {transform_indices = @transform_14, window_bounds = array<i64: 8, 3>}]} {
    %c0_i32 = arith.constant 0 : i32
    %0 = arith.cmpi eq, %arg1, %c0_i32 : i32
    %1 = arith.extui %0 : i1 to i32
    %c0_i32_0 = arith.constant 0 : i32
    %2 = arith.cmpi ne, %1, %c0_i32_0 : i32
    scf.if %2 {
      %cst = arith.constant 0.000000e+00 : f32
      %8 = vector.broadcast %cst : f32 to vector<8x3xf32>
      %c0 = arith.constant 0 : index
      %c0_2 = arith.constant 0 : index
      %9 = vector.load %arg18[%c0, %c0_2] : memref<8x3xf32, #tpu.memory_space<vmem>>, vector<8x3xf32>
      tpu.vector_store %arg18[%c0, %c0_2], %8 {strides = array<i32>} : memref<8x3xf32, #tpu.memory_space<vmem>>, vector<8x3xf32>,
    } else {
    }
    %3 = arith.index_cast %arg0 : i32 to index
    %4 = memref.load %arg3[%3] : memref<3xi32, #tpu.memory_space<smem>>
    %5 = arith.cmpi slt, %arg1, %4 : i32
    %6 = arith.extui %5 : i1 to i32
    %c0_i32_1 = arith.constant 0 : i32
    %7 = arith.cmpi ne, %6, %c0_i32_1 : i32
    scf.if %7 {
      %c0 = arith.constant 0 : index
      %c0_2 = arith.constant 0 : index
      %8 = vector.load %arg4[%c0, %c0_2] : memref<128x19xf32, #tpu.memory_space<vmem>>, vector<128x19xf32>
      %9 = vector.extract_strided_slice %8 {offsets = [0, 0], sizes = [128, 3], strides = [1, 1]} : vector<128x19xf32> to vector<128x3xf32>
      %cst = arith.constant 9.99999997E-7 : f32
      %10 = vector.broadcast %cst : f32 to vector<128x3xf32>
      %11 = arith.addf %9, %10 : vector<128x3xf32>
      %12 = arith.mulf %11, %11 : vector<128x3xf32>
      %cst_3 = arith.constant dense<0.000000e+00> : vector<128xf32>
      %13 = vector.multi_reduction <add>, %12, %cst_3 [1] : vector<128x3xf32> to vector<128xf32>
      %14 = vector.shape_cast %13 : vector<128xf32> to vector<128x1xf32>
      %15 = math.sqrt %14 : vector<128x1xf32>
      %16 = arith.mulf %9, %9 : vector<128x3xf32>
      %cst_4 = arith.constant dense<0.000000e+00> : vector<128xf32>
      %17 = vector.multi_reduction <add>, %16, %cst_4 [1] : vector<128x3xf32> to vector<128xf32>
      %18 = vector.shape_cast %17 : vector<128xf32> to vector<128x1xf32>
      %cst_5 = arith.constant 1.000000e-24 : f32
      %19 = vector.broadcast %cst_5 : f32 to vector<128x1xf32>
      %20 = arith.maximumf %18, %19 : vector<128x1xf32>
      %21 = math.rsqrt %20 : vector<128x1xf32>
      %22 = vector.broadcast %21 : vector<128x1xf32> to vector<128x3xf32>
      %23 = arith.mulf %9, %22 : vector<128x3xf32>
      %c0_6 = arith.constant 0 : index
      %c0_7 = arith.constant 0 : index
      %24 = vector.load %arg6[%c0_6, %c0_7] : memref<1x16xf32, #tpu.memory_space<vmem>>, vector<1x16xf32>
      %25 = vector.broadcast %15 : vector<128x1xf32> to vector<128x16xf32>
      %26 = vector.broadcast %24 : vector<1x16xf32> to vector<128x16xf32>
      %27 = arith.mulf %25, %26 : vector<128x16xf32>
      %c0_8 = arith.constant 0 : index
      %c0_9 = arith.constant 0 : index
      %28 = vector.load %arg7[%c0_8, %c0_9] : memref<1x16xf32, #tpu.memory_space<vmem>>, vector<1x16xf32>
      %29 = vector.broadcast %28 : vector<1x16xf32> to vector<128x16xf32>
      %30 = arith.addf %27, %29 : vector<128x16xf32>
      %cst_10 = arith.constant 0.000000e+00 : f32
      %31 = vector.broadcast %cst_10 : f32 to vector<128x16xf32>
      %32 = arith.maximumf %30, %31 : vector<128x16xf32>
      %c0_11 = arith.constant 0 : index
      %c0_12 = arith.constant 0 : index
      %33 = vector.load %arg8[%c0_11, %c0_12] : memref<16x16xf32, #tpu.memory_space<vmem>>, vector<16x16xf32>
      %cst_13 = arith.constant dense<0.000000e+00> : vector<128x16xf32>
      %34 = tpu.matmul %32, %33, %cst_13 {dimension_numbers = #tpu.dot_dimension_numbers<[1], [0], [0], [1], [0, 0, 1, 1], [], []>} : vector<128x16xf32>, vector<16x16xf32>, vector<128x16xf32> -> vector<128x16xf32>
      %c0_14 = arith.constant 0 : index
      %c0_15 = arith.constant 0 : index
      %35 = vector.load %arg9[%c0_14, %c0_15] : memref<1x16xf32, #tpu.memory_space<vmem>>, vector<1x16xf32>
      %36 = vector.broadcast %35 : vector<1x16xf32> to vector<128x16xf32>
      %37 = arith.addf %34, %36 : vector<128x16xf32>
      %cst_16 = arith.constant 0.000000e+00 : f32
      %38 = vector.broadcast %cst_16 : f32 to vector<128x16xf32>
      %39 = arith.maximumf %37, %38 : vector<128x16xf32>
      %c0_17 = arith.constant 0 : index
      %c0_18 = arith.constant 0 : index
      %40 = vector.load %arg10[%c0_17, %c0_18] : memref<1x16xf32, #tpu.memory_space<vmem>>, vector<1x16xf32>
      %41 = vector.broadcast %40 : vector<1x16xf32> to vector<128x16xf32>
      %42 = arith.mulf %39, %41 : vector<128x16xf32>
      %cst_19 = arith.constant dense<0.000000e+00> : vector<128xf32>
      %43 = vector.multi_reduction <add>, %42, %cst_19 [1] : vector<128x16xf32> to vector<128xf32>
      %44 = vector.shape_cast %43 : vector<128xf32> to vector<128x1xf32>
      %c0_20 = arith.constant 0 : index
      %c0_21 = arith.constant 0 : index
      %45 = vector.load %arg11[%c0_20, %c0_21] : memref<19x32xf32, #tpu.memory_space<vmem>>, vector<19x32xf32>
      %cst_22 = arith.constant dense<0.000000e+00> : vector<128x32xf32>
      %46 = tpu.matmul %8, %45, %cst_22 {dimension_numbers = #tpu.dot_dimension_numbers<[1], [0], [0], [1], [0, 0, 1, 1], [], []>} : vector<128x19xf32>, vector<19x32xf32>, vector<128x32xf32> -> vector<128x32xf32>
      %c0_23 = arith.constant 0 : index
      %c0_24 = arith.constant 0 : index
      %47 = vector.load %arg12[%c0_23, %c0_24] : memref<1x32xf32, #tpu.memory_space<vmem>>, vector<1x32xf32>
      %48 = vector.broadcast %44 : vector<128x1xf32> to vector<128x32xf32>
      %49 = vector.broadcast %47 : vector<1x32xf32> to vector<128x32xf32>
      %50 = arith.mulf %48, %49 : vector<128x32xf32>
      %51 = arith.addf %46, %50 : vector<128x32xf32>
      %c0_25 = arith.constant 0 : index
      %c0_26 = arith.constant 0 : index
      %52 = vector.load %arg13[%c0_25, %c0_26] : memref<1x32xf32, #tpu.memory_space<vmem>>, vector<1x32xf32>
      %53 = vector.broadcast %52 : vector<1x32xf32> to vector<128x32xf32>
      %54 = arith.addf %51, %53 : vector<128x32xf32>
      %cst_27 = arith.constant 0.000000e+00 : f32
      %55 = vector.broadcast %cst_27 : f32 to vector<128x32xf32>
      %56 = arith.maximumf %54, %55 : vector<128x32xf32>
      %c0_28 = arith.constant 0 : index
      %c0_29 = arith.constant 0 : index
      %57 = vector.load %arg14[%c0_28, %c0_29] : memref<32x32xf32, #tpu.memory_space<vmem>>, vector<32x32xf32>
      %cst_30 = arith.constant dense<0.000000e+00> : vector<128x32xf32>
      %58 = tpu.matmul %56, %57, %cst_30 {dimension_numbers = #tpu.dot_dimension_numbers<[1], [0], [0], [1], [0, 0, 1, 1], [], []>} : vector<128x32xf32>, vector<32x32xf32>, vector<128x32xf32> -> vector<128x32xf32>
      %c0_31 = arith.constant 0 : index
      %c0_32 = arith.constant 0 : index
      %59 = vector.load %arg15[%c0_31, %c0_32] : memref<1x32xf32, #tpu.memory_space<vmem>>, vector<1x32xf32>
      %60 = vector.broadcast %59 : vector<1x32xf32> to vector<128x32xf32>
      %61 = arith.addf %58, %60 : vector<128x32xf32>
      %cst_33 = arith.constant 0.000000e+00 : f32
      %62 = vector.broadcast %cst_33 : f32 to vector<128x32xf32>
      %63 = arith.maximumf %61, %62 : vector<128x32xf32>
      %c0_34 = arith.constant 0 : index
      %c0_35 = arith.constant 0 : index
      %64 = vector.load %arg16[%c0_34, %c0_35] : memref<1x32xf32, #tpu.memory_space<vmem>>, vector<1x32xf32>
      %65 = vector.broadcast %64 : vector<1x32xf32> to vector<128x32xf32>
      %66 = arith.mulf %63, %65 : vector<128x32xf32>
      %cst_36 = arith.constant dense<0.000000e+00> : vector<128xf32>
      %67 = vector.multi_reduction <add>, %66, %cst_36 [1] : vector<128x32xf32> to vector<128xf32>
      %68 = vector.shape_cast %67 : vector<128xf32> to vector<128x1xf32>
      %c0_37 = arith.constant 0 : index
      %c0_38 = arith.constant 0 : index
      %69 = memref.load %arg17[%c0_37, %c0_38] : memref<1x1xf32, #tpu.memory_space<smem>>
      %70 = vector.broadcast %69 : f32 to vector<128x1xf32>
      %71 = arith.addf %68, %70 : vector<128x1xf32>
      %72 = vector.broadcast %71 : vector<128x1xf32> to vector<128x3xf32>
      %73 = arith.mulf %72, %23 : vector<128x3xf32>
      %c0_39 = arith.constant 0 : index
      %c0_40 = arith.constant 0 : index
      %74 = vector.load %arg5[%c0_39, %c0_40] : memref<1x128xi32, #tpu.memory_space<vmem>>, vector<1x128xi32>
      %c8_i32 = arith.constant 8 : i32
      %75 = arith.muli %arg0, %c8_i32 : i32
      %76 = vector.broadcast %75 : i32 to vector<1x128xi32>
      %77 = arith.subi %74, %76 : vector<1x128xi32>
      %78 = tpu.iota {dimensions = array<i32: 0>} : vector<8x128xi32>
      %79 = vector.broadcast %77 : vector<1x128xi32> to vector<8x128xi32>
      %80 = arith.cmpi eq, %78, %79 : vector<8x128xi32>
      %81 = arith.extui %80 : vector<8x128xi1> to vector<8x128xi32>
      %82 = arith.sitofp %81 : vector<8x128xi32> to vector<8x128xf32>
      %c0_41 = arith.constant 0 : index
      %c0_42 = arith.constant 0 : index
      %83 = vector.load %arg18[%c0_41, %c0_42] : memref<8x3xf32, #tpu.memory_space<vmem>>, vector<8x3xf32>
      %cst_43 = arith.constant dense<0.000000e+00> : vector<8x3xf32>
      %84 = tpu.matmul %82, %73, %cst_43 {dimension_numbers = #tpu.dot_dimension_numbers<[1], [0], [0], [1], [0, 0, 1, 1], [], []>} : vector<8x128xf32>, vector<128x3xf32>, vector<8x3xf32> -> vector<8x3xf32>
      %85 = arith.addf %83, %84 : vector<8x3xf32>
      %c0_44 = arith.constant 0 : index
      %c0_45 = arith.constant 0 : index
      %86 = vector.load %arg18[%c0_44, %c0_45] : memref<8x3xf32, #tpu.memory_space<vmem>>, vector<8x3xf32>
      tpu.vector_store %arg18[%c0_44, %c0_45], %85 {strides = array<i32>} : memref<8x3xf32, #tpu.memory_space<vmem>>, vector<8x3xf32>,
    } else {
    }
    return
  }
  func.func @transform_0(%arg0: i32, %arg1: i32, %arg2: memref<3xi32, #tpu.memory_space<smem>>, %arg3: memref<3xi32, #tpu.memory_space<smem>>) -> (i32, i32) {
    %0 = arith.index_cast %arg0 : i32 to index
    %1 = memref.load %arg2[%0] : memref<3xi32, #tpu.memory_space<smem>>
    %2 = arith.addi %1, %arg1 : i32
    %c1_i32 = arith.constant 1 : i32
    %3 = arith.minsi %2, %c1_i32 : i32
    %c0_i32 = arith.constant 0 : i32
    %c0_i32_0 = arith.constant 0 : i32
    return %3, %c0_i32 : i32, i32
  }
  func.func @transform_1(%arg0: i32, %arg1: i32, %arg2: memref<3xi32, #tpu.memory_space<smem>>, %arg3: memref<3xi32, #tpu.memory_space<smem>>) -> (i32, i32) {
    %0 = arith.index_cast %arg0 : i32 to index
    %1 = memref.load %arg2[%0] : memref<3xi32, #tpu.memory_space<smem>>
    %2 = arith.addi %1, %arg1 : i32
    %c1_i32 = arith.constant 1 : i32
    %3 = arith.minsi %2, %c1_i32 : i32
    %c0_i32 = arith.constant 0 : i32
    %c0_i32_0 = arith.constant 0 : i32
    return %c0_i32, %3 : i32, i32
  }
  func.func @transform_2(%arg0: i32, %arg1: i32, %arg2: memref<3xi32, #tpu.memory_space<smem>>, %arg3: memref<3xi32, #tpu.memory_space<smem>>) -> (i32, i32) {
    %c0_i32 = arith.constant 0 : i32
    %c0_i32_0 = arith.constant 0 : i32
    %c0_i32_1 = arith.constant 0 : i32
    return %c0_i32, %c0_i32_0 : i32, i32
  }
  func.func @transform_3(%arg0: i32, %arg1: i32, %arg2: memref<3xi32, #tpu.memory_space<smem>>, %arg3: memref<3xi32, #tpu.memory_space<smem>>) -> (i32, i32) {
    %c0_i32 = arith.constant 0 : i32
    %c0_i32_0 = arith.constant 0 : i32
    %c0_i32_1 = arith.constant 0 : i32
    return %c0_i32, %c0_i32_0 : i32, i32
  }
  func.func @transform_4(%arg0: i32, %arg1: i32, %arg2: memref<3xi32, #tpu.memory_space<smem>>, %arg3: memref<3xi32, #tpu.memory_space<smem>>) -> (i32, i32) {
    %c0_i32 = arith.constant 0 : i32
    %c0_i32_0 = arith.constant 0 : i32
    %c0_i32_1 = arith.constant 0 : i32
    return %c0_i32, %c0_i32_0 : i32, i32
  }
  func.func @transform_5(%arg0: i32, %arg1: i32, %arg2: memref<3xi32, #tpu.memory_space<smem>>, %arg3: memref<3xi32, #tpu.memory_space<smem>>) -> (i32, i32) {
    %c0_i32 = arith.constant 0 : i32
    %c0_i32_0 = arith.constant 0 : i32
    %c0_i32_1 = arith.constant 0 : i32
    return %c0_i32, %c0_i32_0 : i32, i32
  }
  func.func @transform_6(%arg0: i32, %arg1: i32, %arg2: memref<3xi32, #tpu.memory_space<smem>>, %arg3: memref<3xi32, #tpu.memory_space<smem>>) -> (i32, i32) {
    %c0_i32 = arith.constant 0 : i32
    %c0_i32_0 = arith.constant 0 : i32
    %c0_i32_1 = arith.constant 0 : i32
    return %c0_i32, %c0_i32_0 : i32, i32
  }
  func.func @transform_7(%arg0: i32, %arg1: i32, %arg2: memref<3xi32, #tpu.memory_space<smem>>, %arg3: memref<3xi32, #tpu.memory_space<smem>>) -> (i32, i32) {
    %c0_i32 = arith.constant 0 : i32
    %c0_i32_0 = arith.constant 0 : i32
    %c0_i32_1 = arith.constant 0 : i32
    return %c0_i32, %c0_i32_0 : i32, i32
  }
  func.func @transform_8(%arg0: i32, %arg1: i32, %arg2: memref<3xi32, #tpu.memory_space<smem>>, %arg3: memref<3xi32, #tpu.memory_space<smem>>) -> (i32, i32) {
    %c0_i32 = arith.constant 0 : i32
    %c0_i32_0 = arith.constant 0 : i32
    %c0_i32_1 = arith.constant 0 : i32
    return %c0_i32, %c0_i32_0 : i32, i32
  }
  func.func @transform_9(%arg0: i32, %arg1: i32, %arg2: memref<3xi32, #tpu.memory_space<smem>>, %arg3: memref<3xi32, #tpu.memory_space<smem>>) -> (i32, i32) {
    %c0_i32 = arith.constant 0 : i32
    %c0_i32_0 = arith.constant 0 : i32
    %c0_i32_1 = arith.constant 0 : i32
    return %c0_i32, %c0_i32_0 : i32, i32
  }
  func.func @transform_10(%arg0: i32, %arg1: i32, %arg2: memref<3xi32, #tpu.memory_space<smem>>, %arg3: memref<3xi32, #tpu.memory_space<smem>>) -> (i32, i32) {
    %c0_i32 = arith.constant 0 : i32
    %c0_i32_0 = arith.constant 0 : i32
    %c0_i32_1 = arith.constant 0 : i32
    return %c0_i32, %c0_i32_0 : i32, i32
  }
  func.func @transform_11(%arg0: i32, %arg1: i32, %arg2: memref<3xi32, #tpu.memory_space<smem>>, %arg3: memref<3xi32, #tpu.memory_space<smem>>) -> (i32, i32) {
    %c0_i32 = arith.constant 0 : i32
    %c0_i32_0 = arith.constant 0 : i32
    %c0_i32_1 = arith.constant 0 : i32
    return %c0_i32, %c0_i32_0 : i32, i32
  }
  func.func @transform_12(%arg0: i32, %arg1: i32, %arg2: memref<3xi32, #tpu.memory_space<smem>>, %arg3: memref<3xi32, #tpu.memory_space<smem>>) -> (i32, i32) {
    %c0_i32 = arith.constant 0 : i32
    %c0_i32_0 = arith.constant 0 : i32
    %c0_i32_1 = arith.constant 0 : i32
    return %c0_i32, %c0_i32_0 : i32, i32
  }
  func.func @transform_13(%arg0: i32, %arg1: i32, %arg2: memref<3xi32, #tpu.memory_space<smem>>, %arg3: memref<3xi32, #tpu.memory_space<smem>>) -> (i32, i32) {
    %c0_i32 = arith.constant 0 : i32
    %c0_i32_0 = arith.constant 0 : i32
    %c0_i32_1 = arith.constant 0 : i32
    return %c0_i32, %c0_i32_0 : i32, i32
  }
  func.func @transform_14(%arg0: i32, %arg1: i32, %arg2: memref<3xi32, #tpu.memory_space<smem>>, %arg3: memref<3xi32, #tpu.memory_space<smem>>) -> (i32, i32) {
    %c0_i32 = arith.constant 0 : i32
    %c0_i32_0 = arith.constant 0 : i32
    return %arg0, %c0_i32 : i32, i32
  }
}

</mosaic_0001>

<bundles_post_ra>
// kernel: tpu_custom_call.1
= control target key start
LH: loop header
LB: loop body
LE: loop exit
PB: predicated region body
PF: predicated region fallthrough
CT: control target
= control target key end

     0   :  { %s3396_s0 = inlined_call_operand.vmem [shape: s32[3], index: 0, kind: input, shape index: {}]   ;;  %s3397_s2 = inlined_call_operand.vmem [shape: f32[256,19], index: 2, kind: input, shape index: {}]   ;;  %s3398_s3 = inlined_call_operand.vmem [shape: s32[1,256], index: 3, kind: input, shape index: {}]   ;;  %s3399_s4 = inlined_call_operand.vmem [shape: f32[1,16], index: 4, kind: input, shape index: {}]   ;;  %s3400_s5 = inlined_call_operand.vmem [shape: f32[1,16], index: 5, kind: input, shape index: {}]   ;;  %s3401_s6 = inlined_call_operand.vmem [shape: f32[16,16], index: 6, kind: input, shape index: {}]   ;;  %s3402_s7 = inlined_call_operand.vmem [shape: f32[1,16], index: 7, kind: input, shape index: {}]   ;;  %s3403_s8 = inlined_call_operand.vmem [shape: f32[1,16], index: 8, kind: input, shape index: {}]   ;;  %s3404_s9 = inlined_call_operand.vmem [shape: f32[19,32], index: 9, kind: input, shape index: {}]   ;;  %s3405_s10 = inlined_call_operand.vmem [shape: f32[1,32], index: 10, kind: input, shape index: {}]   ;;  %s3406_s11 = inlined_call_operand.vmem [shape: f32[1,32], index: 11, kind: input, shape index: {}]   ;;  %s3407_s12 = inlined_call_operand.vmem [shape: f32[32,32], index: 12, kind: input, shape index: {}]   ;;  %s3408_s13 = inlined_call_operand.vmem [shape: f32[1,32], index: 13, kind: input, shape index: {}]   ;;  %s3409_s14 = inlined_call_operand.vmem [shape: f32[1,32], index: 14, kind: input, shape index: {}]   ;;  %s3410_s16 = inlined_call_operand.vmem [shape: f32[24,3], index: 16, kind: output, shape index: {}]   ;;  %s3411_s1 = inlined_call_operand.vmem [shape: s32[3], index: 1, kind: input, shape index: {}]   ;;  %s3412_s15 = inlined_call_operand.<no memory space> [shape: f32[1,1], index: 15, kind: input, shape index: {}]  }
   0x1   :  { %3414 = sst [smem:[#allocation10_spill]] %s3396_s0  ;;  %s25_s26 = sshll.u32 %s3411_s1, 4  ;;  %s26_s26 = int_to_ptr.vmem [resolvable:$true] %s25_s26 }
   0x2   :  { %3415 = sst [smem:[#allocation11_spill]] %s3406_s11  ;;  %s3416_s23 = sld [smem:[#allocation10_spill]] }
   0x8   :  { %s21_s11 = sshll.u32 %s3416_s23, 4  ;;  %s22_s11 = int_to_ptr.vmem [resolvable:$true] %s21_s11 }
   0x9   :  { %s2438_s27 = scalar_lea.vmem %s22_s11, 16  ;;  %p2443_p1 = scmp.lt.s32.totalorder %s22_s11, %s22_s11 }
   0xa   :  { %p2439_p0 = scmp.ne.s32.totalorder %s22_s11, %s2438_s27  ;;  %p2444_p2 = scmp.lt.s32.totalorder %s2438_s27, %s2438_s27 }
   0xc   :  { %p2445_p3 = por %p2444_p2, %p2443_p1 }
   0xe   :  { %p2446_p4 = pnand %p2445_p3, %p2439_p0 }
  0x10   :  { %2449 = shalt.err (!%p2446_p4)  }
  0x11   :  { %s2504_s28 = smov [#allocation3]   ;;  %s2450_s29 = scalar_lea.vmem %s26_s26, 16 }
  0x12   :  { %24 = dma.vmem_to_smem %s22_s11, 16, %s2504_s28, [#allocation2] }
  0x13   :  { %p2451_p5 = scmp.ne.s32.totalorder %s26_s26, %s2450_s29  ;;  %p2455_p6 = scmp.lt.s32.totalorder %s26_s26, %s26_s26 }
  0x14   :  { %p2456_p7 = scmp.lt.s32.totalorder %s2450_s29, %s2450_s29 }
  0x16   :  { %p2457_p8 = por %p2456_p7, %p2455_p6 }
  0x18   :  { %p2458_p9 = pnand %p2457_p8, %p2451_p5 }
  0x1a   :  { %2461 = shalt.err (!%p2458_p9)  }
  0x1b   :  { %s2505_s30 = smov [#allocation4]   ;;  %29 = sst [smem:[#allocation5]] %s3412_s15 }
  0x1c   :  { %28 = dma.vmem_to_smem %s26_s26, 16, %s2505_s30, [#allocation2] }
  0x1d   :  { %2482 = dma.done.wait [#allocation2], 32 }
  0x1e   :  { %2483 = vsyncadd [#allocation2], 4294967264 }
  0x1f   :  { %31 = sfence }
  0x20   :  { %s2605_s17 = smov 0   ;;  %s2607_s18 = smov 0  }
  0x21   :  { %s2609_s11 = smov 0   ;;  %s2611_s19 = smov 0  }
  0x22   :  { %s2613_s20 = smov 0  }
  0x23 LB: > { %3417 = sst [smem:[#allocation7_spill]] %s2498_s19  ;;  %s46_s15 = sadd.s32 1, %s2494_s11  ;;  %s2502_s20 = sphi %s2613_s20, %s37_s20   ;;  %s2498_s19 = sphi %s2611_s19, %s3426_s19   ;;  %s2494_s11 = sphi %s2609_s11, %s3425_s11   ;;  %s2490_s18 = sphi %s2607_s18, %s3421_s18   ;;  %s2486_s17 = sphi %s2605_s17, %s3424_s17  }
  0x24   : > { %s49_s21 = sadd.s32 1, %s2498_s19  ;;  %p47_p10 = scmp.ge.s32.totalorder %s46_s15, 2 }
  0x25   : > { %p1999_p11 = scmp.ge.s32.totalorder %s2502_s20, 1  ;;  %p478_p12 = scmp.lt.s32.totalorder %s2502_s20, 7 }
  0x26   : > { %s3428_s15 = smov (%p47_p10, %s46_s15), 0  ;;  %s3430_s21 = smov (!%p47_p10, %s49_s21), %s2498_s19 }
  0x27   : > { %3418 = sst [smem:[#allocation8_spill]] %s3428_s15  ;;  %p479_p13 = pnand %p1999_p11, %p478_p12 }
  0x28   : > { %p51_p0 = scmp.ge.s32.totalorder %s3430_s21, 3  ;;  %s534_s22 = sld [smem:[#allocation3 + %s2490_s18]] (!%p479_p13) }
  0x29   : > { %482 = sbr.rel (%p479_p13) target bundleno = 1230 (0x4ce), region = 76  ;;  %s548_s23 = sld [smem:[#allocation3 + %s2490_s18]] (!%p479_p13) }
  0x2a   : > { %s3432_s21 = smov (%p51_p0, %s3430_s21), 0  ;;  %p559_p1 = scmp.lt.s32.totalorder (!%p479_p13), %s2490_s18, 2 }
  0x2b   : > { %3419 = sst [smem:[#allocation9_spill]] %s3432_s21  ;;  %p2006_p5 = scmp.ne.s32.totalorder (!%p479_p13), %s2486_s17, 0 }
  0x2e   : > { %s535_s26 = sadd.s32 (!%p479_p13), %s2486_s17, %s534_s22 }
  0x2f   : > { %s549_s27 = sadd.s32 (!%p479_p13), %s2486_s17, %s548_s23  ;;  %p536_p2 = scmp.lt.s32.totalorder (!%p479_p13), %s535_s26, 1 }
  0x30   : > { %s560_s24 = scalar_select %p559_p1, %s2490_s18, 2 }
  0x31   : > { %p550_p3 = scmp.lt.s32.totalorder %s549_s27, 1  ;;  %s3434_s26 = smov (!%p536_p2, %s535_s26), 1  ;;  %vm567_vm0 = vcmask (!%p2006_p5), 23552   ;;  %v2506_v0 = vmov (!%p2006_p5), 0.0  }
  0x32   : > { %s2005_s25 = sshll.u32 %s560_s24, 3  ;;  %s2000_s1 = sshll.u32 %s3434_s26, 4 }
  0x33   : > { %s2648_s30 = scalar_lea.vmem %s3410_s16, %s2005_s25  ;;  %s3436_s27 = smov (!%p550_p3, %s549_s27), 1 }
  0x34   : > { %p539_p4 = scmp.lt.s32.totalorder %s2000_s1, 31  ;;  %s3438_s27 = smov (!%p550_p3, %s3436_s27), 1  ;;  %568 = vst.msk [vmem:[%s2648_s30] sm:$0xff] (!%p2006_p5), %vm567_vm0, %v2506_v0 }
  0x35   : > { %s554_s22 = scalar_lea.vmem %s3398_s3, %s3438_s27  ;;  %566 = sbr.rel (%p2006_p5) target bundleno = 60 (0x3c), region = 80 }
  0x36   : > { %s3440_s1 = smov (!%p539_p4, %s2000_s1), 31 }
  0x37   : > { %s2001_s23 = sshll.u32 %s3440_s1, 3 }
  0x38   : > { %s2659_s19 = scalar_lea.vmem %s3397_s2, %s2001_s23 }
  0x3c PF: > { %s569_s25 = sld [smem:[#allocation4 + %s2490_s18]] }
  0x42   : > { %p2007_p6 = scmp.ge.s32.totalorder %s2486_s17, %s569_s25 }
  0x43   : > { %v2666_v1 = vld [vmem:[%s2659_s19 + $0x10] sm:$0xff] (!%p2007_p6)  ;;  %v2669_v2 = vld [vmem:[%s2659_s19] sm:$0xff] (!%p2007_p6)  ;;  %v2672_v3 = vld [vmem:[%s2659_s19 + $0x18] sm:$0xff] (!%p2007_p6)  ;;  %vm622_vm1 = vcmask (!%p2007_p6), 23552   ;;  %vm966_vm10 = vcmask (!%p2007_p6), 130048   ;;  %s3420_s23 = sld [smem:[#allocation11_spill]] (!%p2007_p6) }
  0x44   : > { %573 = sbr.rel (%p2007_p6) target bundleno = 1230 (0x4ce), region = 84  ;;  %v592_v4 = vadd.f32 (!%p2007_p6), 1e-06, %v2666_v1  ;;  %v590_v5 = vadd.f32 (!%p2007_p6), 1e-06, %v2669_v2  ;;  %v2678_v7 = vld [vmem:[%s2659_s19 + $0x8] sm:$0xff] (!%p2007_p6) }
  0x45   : > { %v593_v6 = vadd.f32 (!%p2007_p6), 1e-06, %v2672_v3  ;;  %v2681_v8 = vld [vmem:[%s2659_s19 + $0x28] sm:$0xff] (!%p2007_p6)  ;;  %v2684_v9 = vld [vmem:[%s2659_s19 + $0x20] sm:$0xff] (!%p2007_p6)  ;;  %v591_v13 = vadd.f32 (!%p2007_p6), 1e-06, %v2678_v7 }
  0x46   : > { %v608_v10 = vmul.f32 (!%p2007_p6), %v592_v4, %v592_v4  ;;  %v606_v11 = vmul.f32 (!%p2007_p6), %v590_v5, %v590_v5  ;;  %v2688_v14 = vld [vmem:[%s2659_s19 + $0x38] sm:$0xff] (!%p2007_p6)  ;;  %v595_v15 = vadd.f32 (!%p2007_p6), 1e-06, %v2681_v8  ;;  %v594_v16 = vadd.f32 (!%p2007_p6), 1e-06, %v2684_v9  ;;  %v2693_v17 = vld [vmem:[%s2659_s19 + $0x30] sm:$0xff] (!%p2007_p6) }
  0x47   : > { %v609_v12 = vmul.f32 (!%p2007_p6), %v593_v6, %v593_v6  ;;  %v607_v20 = vmul.f32 (!%p2007_p6), %v591_v13, %v591_v13  ;;  %v597_v22 = vadd.f32 (!%p2007_p6), 1e-06, %v2688_v14  ;;  %v596_v26 = vadd.f32 (!%p2007_p6), 1e-06, %v2693_v17  ;;  %v2702_v27 = vld [vmem:[%s2659_s19 + $0x48] sm:$0xff] (!%p2007_p6)  ;;  %v2705_v28 = vld [vmem:[%s2659_s19 + $0x40] sm:$0xff] (!%p2007_p6) }
  0x48   : > { %v629_v18 = vsel (!%p2007_p6), %vm622_vm1, %v608_v10, 0.0  ;;  %v623_v19 = vsel (!%p2007_p6), %vm622_vm1, %v606_v11, 0.0  ;;  %v611_v24 = vmul.f32 (!%p2007_p6), %v595_v15, %v595_v15  ;;  %v610_v25 = vmul.f32 (!%p2007_p6), %v594_v16, %v594_v16  ;;  %v2712_v35 = vld [vmem:[%s2659_s19 + $0x58] sm:$0xff] (!%p2007_p6)  ;;  %v2715_v36 = vld [vmem:[%s2659_s19 + $0x50] sm:$0xff] (!%p2007_p6)  ;;  %v2719_v39 = vld [vmem:[%s2659_s19 + $0x68] sm:$0xff] (!%p2007_p6)  ;;  %s1802_s21 = sld [smem:[#allocation5]] (!%p2007_p6) }
  0x49   : > { %630 = vadd.xlane.f32.xlu1 (!%p2007_p6), %v629_v18  ;;  %624 = vadd.xlane.f32.xlu0 (!%p2007_p6), %v623_v19  ;;  %v632_v21 = vsel (!%p2007_p6), %vm622_vm1, %v609_v12, 0.0  ;;  %v626_v23 = vsel (!%p2007_p6), %vm622_vm1, %v607_v20, 0.0  ;;  %v613_v29 = vmul.f32 (!%p2007_p6), %v597_v22, %v597_v22  ;;  %v599_v30 = vadd.f32 (!%p2007_p6), 1e-06, %v2702_v27  ;;  %v2725_v44 = vld [vmem:[%s2659_s19 + $0x60] sm:$0xff] (!%p2007_p6)  ;;  %v2732_v51 = vld [vmem:[%s2659_s19 + $0x78] sm:$0xff] (!%p2007_p6) }
  0x4a   : > { %v638_v31 = vsel (!%p2007_p6), %vm622_vm1, %v611_v24, 0.0  ;;  %v635_v32 = vsel (!%p2007_p6), %vm622_vm1, %v610_v25, 0.0  ;;  %v612_v33 = vmul.f32 (!%p2007_p6), %v596_v26, %v596_v26  ;;  %v598_v34 = vadd.f32 (!%p2007_p6), 1e-06, %v2705_v28  ;;  %v2735_v52 = vld [vmem:[%s2659_s19 + $0x70] sm:$0xff] (!%p2007_p6)  ;;  %v957_v4 = vld [vmem:[%s3401_s6] sm:$0xff] (!%p2007_p6) }
  0x4b   : > { %v644_v37 = vsel %vm622_vm1, %v613_v29, 0.0  ;;  %v615_v38 = vmul.f32 %v599_v30, %v599_v30  ;;  %v601_v42 = vadd.f32 1e-06, %v2712_v35  ;;  %v600_v43 = vadd.f32 1e-06, %v2715_v36  ;;  %v958_v5 = vld [vmem:[%s3401_s6 + $0x8] sm:$0xff] }
  0x4c   : > { %v641_v40 = vsel %vm622_vm1, %v612_v33, 0.0  ;;  %v614_v41 = vmul.f32 %v598_v34, %v598_v34  ;;  %v603_v45 = vadd.f32 1e-06, %v2719_v39  ;;  %v602_v46 = vadd.f32 1e-06, %v2725_v44  ;;  %v1247_v10 = vld [vmem:[%s3404_s9] sm:$0xff] }
  0x4d   : > { %633 = vadd.xlane.f32.xlu1 %v632_v21  ;;  %627 = vadd.xlane.f32.xlu0 %v626_v23  ;;  %v650_v47 = vsel %vm622_vm1, %v615_v38, 0.0  ;;  %v617_v49 = vmul.f32 %v601_v42, %v601_v42  ;;  %v616_v50 = vmul.f32 %v600_v43, %v600_v43  ;;  %v605_v57 = vadd.f32 1e-06, %v2732_v51  ;;  %v1248_v11 = vld [vmem:[%s3404_s9 + $0x8] sm:$0xff]  ;;  %s2065_s26 = sshll.u32 %s2490_s18, 3 }
  0x4e   : > { %v647_v48 = vsel %vm622_vm1, %v614_v41, 0.0  ;;  %v619_v53 = vmul.f32 %v603_v45, %v603_v45  ;;  %v618_v54 = vmul.f32 %v602_v46, %v602_v46  ;;  %v604_v58 = vadd.f32 1e-06, %v2735_v52  ;;  %v2786_v41 = vld [vmem:[%s3399_s4] ss:$0 sm:$0xff] }
  0x4f   : > { %v656_v55 = vsel %vm622_vm1, %v617_v49, 0.0  ;;  %v653_v56 = vsel %vm622_vm1, %v616_v50, 0.0  ;;  %v621_v61 = vmul.f32 %v605_v57, %v605_v57  ;;  %v2269_v6 = vpack.c.bf16 %v958_v5, %v957_v4 }
  0x50   : > { %v662_v59 = vsel %vm622_vm1, %v619_v53, 0.0  ;;  %v659_v60 = vsel %vm622_vm1, %v618_v54, 0.0  ;;  %v620_v62 = vmul.f32 %v604_v58, %v604_v58  ;;  %v2757_v12 = vpack.c.bf16 %v1248_v11, %v1247_v10 }
  0x51   : > { %639 = vadd.xlane.f32.xlu1 %v638_v31  ;;  %636 = vadd.xlane.f32.xlu0 %v635_v32  ;;  %v668_v63 = vsel %vm622_vm1, %v621_v61, 0.0 }
  0x52   : > { %v665_v0 = vsel %vm622_vm1, %v620_v62, 0.0  ;;  %2270 = vmatprep.subr.bf16.mxu0 %v2269_v6  ;;  %2309 = vmatprep.subr.bf16.mxu1 %v2269_v6 }
  0x53   : > { %2272 = vmatpush3.bf16.msra.mxu0 %v2269_v6  ;;  %2310 = vmatpush3.bf16.msra.mxu1 %v2269_v6 }
  0x54   : > { %2274 = vmatprep.subr.bf16.mxu1 %v2757_v12 }
  0x55   : > { %645 = vadd.xlane.f32.xlu1 %v644_v37  ;;  %642 = vadd.xlane.f32.xlu0 %v641_v40 }
  0x59   : > { %651 = vadd.xlane.f32.xlu1 %v650_v47  ;;  %648 = vadd.xlane.f32.xlu0 %v647_v48 }
  0x5d   : > { %657 = vadd.xlane.f32.xlu1 %v656_v55  ;;  %654 = vadd.xlane.f32.xlu0 %v653_v56 }
  0x61   : > { %663 = vadd.xlane.f32.xlu1 %v662_v59  ;;  %660 = vadd.xlane.f32.xlu0 %v659_v60  ;;  %v2812_v60 = vld [vmem:[%s3400_s5] ss:$0 sm:$0xff] }
  0x65   : > { %669 = vadd.xlane.f32.xlu1 %v668_v63  ;;  %666 = vadd.xlane.f32.xlu0 %v665_v0 }
  0xd6   : > { %v631_v13 = vpop.xlane.xlu1 %630  ;;  %v625_v15 = vpop.xlane.xlu0 %624 }
  0xd7   : > { %2358 = vrsqrt.f32 %v631_v13  ;;  %vm687_vm2 = vcmp.eq.f32.partialorder %v631_v13, inf  ;;  %vm689_vm3 = vcmp.eq.f32.partialorder %v631_v13, 0.0  ;;  %v690_v26 = vand.u32 2147483648, %v631_v13 }
  0xd8   : > { %2360 = vrsqrt.f32 %v625_v15  ;;  %vm673_vm4 = vcmp.eq.f32.partialorder %v625_v15, inf  ;;  %vm675_vm5 = vcmp.eq.f32.partialorder %v625_v15, 0.0  ;;  %v676_v32 = vand.u32 2147483648, %v625_v15 }
  0xda   : > { %v2760_v16 = vpop.xlane.xlu1 %633  ;;  %v628_v18 = vpop.xlane.xlu0 %627 }
  0xdb   : > { %2362 = vrsqrt.f32 %v2760_v16  ;;  %vm694_vm6 = vcmp.eq.f32.partialorder %v2760_v16, inf  ;;  %vm696_vm7 = vcmp.eq.f32.partialorder %v2760_v16, 0.0  ;;  %v697_v37 = vand.u32 2147483648, %v2760_v16 }
  0xdc   : > { %2364 = vrsqrt.f32 %v628_v18  ;;  %vm680_vm8 = vcmp.eq.f32.partialorder %v628_v18, inf  ;;  %vm682_vm9 = vcmp.eq.f32.partialorder %v628_v18, 0.0  ;;  %v683_v45 = vand.u32 2147483648, %v628_v18 }
  0xde   : > { %v2763_v19 = vpop.xlane.xlu1 %639  ;;  %v2765_v20 = vpop.xlane.xlu0 %636 }
  0xdf   : > { %2366 = vrsqrt.f32 %v2763_v19  ;;  %vm708_vm11 = vcmp.eq.f32.partialorder %v2763_v19, inf  ;;  %v711_v46 = vand.u32 2147483648, %v2763_v19  ;;  %vm701_vm12 = vcmp.eq.f32.partialorder %v2765_v20, inf }
  0xe0   : > { %2368 = vrsqrt.f32 %v2765_v20  ;;  %vm703_vm13 = vcmp.eq.f32.partialorder %v2765_v20, 0.0  ;;  %v704_v49 = vand.u32 2147483648, %v2765_v20 }
  0xe1   : > { %v2359_v21 = vpop.eup %2358 }
  0xe2   : > { %v2361_v22 = vpop.eup %2360  ;;  %v686_v23 = vmul.f32 %v2359_v21, %v631_v13  ;;  %v2769_v24 = vpop.xlane.xlu1 %645 }
  0xe3   : > { %v2771_v25 = vpop.xlane.xlu0 %642  ;;  %2370 = vrsqrt.f32 %v2769_v24  ;;  %v672_v31 = vmul.f32 %v2361_v22, %v625_v15  ;;  %vm722_vm14 = vcmp.eq.f32.partialorder %v2769_v24, inf  ;;  %v725_v56 = vand.u32 2147483648, %v2769_v24 }
  0xe4   : > { %v688_v29 = vsel %vm687_vm2, %v631_v13, %v686_v23  ;;  %2372 = vrsqrt.f32 %v2771_v25  ;;  %vm715_vm15 = vcmp.eq.f32.partialorder %v2771_v25, inf  ;;  %v718_v63 = vand.u32 2147483648, %v2771_v25 }
  0xe5   : > { %v2363_v30 = vpop.eup %2362  ;;  %v691_v42 = vsel %vm689_vm3, %v690_v26, %v688_v29  ;;  %v674_v50 = vsel %vm673_vm4, %v625_v15, %v672_v31  ;;  %vm710_vm2 = vcmp.eq.f32.partialorder %v2763_v19, 0.0  ;;  %vm724_vm3 = vcmp.eq.f32.partialorder %v2769_v24, 0.0 }
  0xe6   : > { %v2365_v33 = vpop.eup %2364  ;;  %v693_v34 = vmul.f32 %v2363_v30, %v2760_v16  ;;  %v2779_v38 = vpop.xlane.xlu1 %651  ;;  %v904_v53 = vmul.f32 %v2786_v41, %v691_v42  ;;  %v677_v59 = vsel %vm675_vm5, %v676_v32, %v674_v50  ;;  %vm717_vm4 = vcmp.eq.f32.partialorder %v2771_v25, 0.0 }
  0xe7   : > { %v2781_v40 = vpop.xlane.xlu0 %648  ;;  %v679_v43 = vmul.f32 %v2365_v33, %v628_v18  ;;  %2374 = vrsqrt.f32 %v2779_v38  ;;  %vm736_vm0 = vcmp.eq.f32.partialorder %v2779_v38, inf  ;;  %v902_v0 = vmul.f32 %v2786_v41, %v677_v59 }
  0xe8   : > { %2376 = vrsqrt.f32 %v2781_v40  ;;  %v695_v55 = vsel %vm694_vm6, %v2760_v16, %v693_v34  ;;  %v927_v10 = vadd.f32 %v2812_v60, %v904_v53  ;;  %vm729_vm5 = vcmp.eq.f32.partialorder %v2781_v40, inf }
  0xe9   : > { %v2367_v47 = vpop.eup %2366  ;;  %v681_v48 = vsel %vm680_vm8, %v628_v18, %v679_v43  ;;  %v698_v11 = vsel %vm696_vm7, %v697_v37, %v695_v55  ;;  %v739_v18 = vand.u32 2147483648, %v2779_v38  ;;  %v925_v21 = vadd.f32 %v2812_v60, %v902_v0 }
  0xea   : > { %v2369_v54 = vpop.eup %2368  ;;  %v2804_v57 = vpop.xlane.xlu1 %657  ;;  %v684_v62 = vsel %vm682_vm9, %v683_v45, %v681_v48  ;;  %v707_v5 = vmul.f32 %v2367_v47, %v2763_v19  ;;  %vm738_vm6 = vcmp.eq.f32.partialorder %v2779_v38, 0.0  ;;  %vm731_vm7 = vcmp.eq.f32.partialorder %v2781_v40, 0.0 }
  0xeb   : > { %v2806_v58 = vpop.xlane.xlu0 %654  ;;  %v700_v61 = vmul.f32 %v2369_v54, %v2765_v20  ;;  %2378 = vrsqrt.f32 %v2804_v57  ;;  %v903_v26 = vmul.f32 %v2786_v41, %v684_v62  ;;  %v941_v30 = vmax.f32 %v925_v21, 0.0 }
  0xec   : > { %2380 = vrsqrt.f32 %v2806_v58  ;;  %v905_v31 = vmul.f32 %v2786_v41, %v698_v11  ;;  %v709_v33 = vsel %vm708_vm11, %v2763_v19, %v707_v5  ;;  %v732_v34 = vand.u32 2147483648, %v2781_v40 }
  0xed   : > { %v2371_v4 = vpop.eup %2370  ;;  %v702_v6 = vsel %vm701_vm12, %v2765_v20, %v700_v61  ;;  %v753_v37 = vand.u32 2147483648, %v2804_v57  ;;  %v943_v20 = vmax.f32 %v927_v10, 0.0  ;;  %vm750_vm8 = vcmp.eq.f32.partialorder %v2804_v57, inf  ;;  %2148 = vmatprep.mubr.msk.f32.mxu0 %vm966_vm10, %v941_v30 }
  0xee   : > { %v2373_v13 = vpop.eup %2372  ;;  %v721_v15 = vmul.f32 %v2371_v4, %v2769_v24  ;;  %v2835_v22 = vpop.xlane.xlu1 %663  ;;  %v705_v29 = vsel %vm703_vm13, %v704_v49, %v702_v6  ;;  %v926_v47 = vadd.f32 %v2812_v60, %v903_v26  ;;  %v928_v61 = vadd.f32 %v2812_v60, %v905_v31 }
  0xef   : > { %v2837_v23 = vpop.xlane.xlu0 %660  ;;  %v714_v16 = vmul.f32 %v2373_v13, %v2771_v25  ;;  %2382 = vrsqrt.f32 %v2835_v22  ;;  %v906_v50 = vmul.f32 %v2786_v41, %v705_v29  ;;  %vm764_vm9 = vcmp.eq.f32.partialorder %v2835_v22, inf }
  0xf0   : > { %2384 = vrsqrt.f32 %v2837_v23  ;;  %v723_v43 = vsel %vm722_vm14, %v2769_v24, %v721_v15  ;;  %v767_v55 = vand.u32 2147483648, %v2835_v22  ;;  %vm757_vm11 = vcmp.eq.f32.partialorder %v2837_v23, inf }
  0xf1   : > { %v2375_v32 = vpop.eup %2374  ;;  %v716_v53 = vsel %vm715_vm15, %v2771_v25, %v714_v16  ;;  %v942_v59 = vmax.f32 %v926_v47, 0.0  ;;  %vm752_vm12 = vcmp.eq.f32.partialorder %v2804_v57, 0.0  ;;  %v760_v5 = vand.u32 2147483648, %v2837_v23 }
  0xf2   : > { %v2377_v42 = vpop.eup %2376  ;;  %v735_v45 = vmul.f32 %v2375_v32, %v2779_v38  ;;  %v2861_v48 = vpop.xlane.xlu1 %669  ;;  %vm766_vm13 = vcmp.eq.f32.partialorder %v2835_v22, 0.0  ;;  %vm759_vm14 = vcmp.eq.f32.partialorder %v2837_v23, 0.0  ;;  %v929_v15 = vadd.f32 %v2812_v60, %v906_v50 }
  0xf3   : > { %v2863_v49 = vpop.xlane.xlu0 %666  ;;  %v728_v54 = vmul.f32 %v2377_v42, %v2781_v40  ;;  %2386 = vrsqrt.f32 %v2861_v48  ;;  %v781_v6 = vand.u32 2147483648, %v2861_v48  ;;  %2149 = vmatmul.mubr.msk.f32.vlgmr.msra.gmra.mrb[0].mxu0 %vm966_vm10, %v942_v59  ;;  %v712_v21 = vsel %vm710_vm2, %v711_v46, %v709_v33 }
  0xf4   : > { %2388 = vrsqrt.f32 %v2863_v49  ;;  %v737_v0 = vsel %vm736_vm0, %v2779_v38, %v735_v45  ;;  %v774_v13 = vand.u32 2147483648, %v2863_v49  ;;  %2151 = vmatprep.mubr.msk.f32.mxu0 %vm966_vm10, %v943_v20  ;;  %vm778_vm15 = vcmp.eq.f32.partialorder %v2861_v48, inf }
  0xf5   : > { %v2379_v62 = vpop.eup %2378  ;;  %v730_v4 = vsel %vm729_vm5, %v2781_v40, %v728_v54  ;;  %v907_v26 = vmul.f32 %v2786_v41, %v712_v21  ;;  %v719_v16 = vsel %vm717_vm4, %v718_v63, %v716_v53  ;;  %v726_v29 = vsel %vm724_vm3, %v725_v56, %v723_v43 }
  0xf6   : > { %v2381_v10 = vpop.eup %2380  ;;  %v749_v11 = vmul.f32 %v2379_v62, %v2804_v57  ;;  %v733_v19 = vsel %vm731_vm7, %v732_v34, %v730_v4  ;;  %vm780_vm0 = vcmp.eq.f32.partialorder %v2861_v48, 0.0  ;;  %vm771_vm2 = vcmp.eq.f32.partialorder %v2863_v49, inf }
  0xf7   : > { %v944_v46 = vmax.f32 %v928_v61, 0.0  ;;  %v945_v30 = vmax.f32 %v929_v15, 0.0  ;;  %v908_v31 = vmul.f32 %v2786_v41, %v719_v16  ;;  %v909_v32 = vmul.f32 %v2786_v41, %v726_v29 }
  0xf8   : > { %vm773_vm4 = vcmp.eq.f32.partialorder %v2863_v49, 0.0  ;;  %v930_v63 = vadd.f32 %v2812_v60, %v907_v26  ;;  %v910_v24 = vmul.f32 %v2786_v41, %v733_v19  ;;  %v740_v40 = vsel %vm738_vm6, %v739_v18, %v737_v0 }
  0xf9   : > { %v2383_v25 = vpop.eup %2382  ;;  %v742_v56 = vmul.f32 %v2381_v10, %v2806_v58  ;;  %2152 = vmatmul.mubr.msk.f32.gmra.mrb[2].mxu0 %vm966_vm10, %v944_v46  ;;  %v931_v20 = vadd.f32 %v2812_v60, %v908_v31  ;;  %v932_v42 = vadd.f32 %v2812_v60, %v909_v32  ;;  %v911_v43 = vmul.f32 %v2786_v41, %v740_v40 }
  0xfa   : > { %v2385_v33 = vpop.eup %2384  ;;  %v763_v34 = vmul.f32 %v2383_v25, %v2835_v22  ;;  %v751_v45 = vsel %vm750_vm8, %v2804_v57, %v749_v11  ;;  %2154 = vmatprep.mubr.msk.f32.mxu0 %vm966_vm10, %v945_v30  ;;  %v946_v18 = vmax.f32 %v930_v63, 0.0  ;;  %v933_v47 = vadd.f32 %v2812_v60, %v910_v24 }
  0xfb   : > { %v756_v38 = vmul.f32 %v2385_v33, %v2837_v23  ;;  %v947_v53 = vmax.f32 %v931_v20, 0.0  ;;  %v948_v54 = vmax.f32 %v932_v42, 0.0  ;;  %vm743_vm3 = vcmp.eq.f32.partialorder %v2806_v58, inf }
  0xfc   : > { %v765_v50 = vsel %vm764_vm9, %v2835_v22, %v763_v34  ;;  %v949_v62 = vmax.f32 %v933_v47, 0.0  ;;  %v934_v0 = vadd.f32 %v2812_v60, %v911_v43  ;;  %v744_v4 = vsel %vm743_vm3, %v2806_v58, %v742_v56 }
  0xfd   : > { %v2387_v59 = vpop.eup %2386  ;;  %v758_v61 = vsel %vm757_vm11, %v2837_v23, %v756_v38  ;;  %2155 = vmatmul.mubr.msk.f32.gmra.mrb[4].mxu0 %vm966_vm10, %v946_v18  ;;  %vm745_vm5 = vcmp.eq.f32.partialorder %v2806_v58, 0.0  ;;  %v746_v15 = vand.u32 2147483648, %v2806_v58  ;;  %v754_v21 = vsel %vm752_vm12, %v753_v37, %v751_v45  ;;  %v3043_v38 = vld [vmem:[%s3403_s8] ss:$0 sm:$0xff] }
  0xfe   : > { %v2389_v10 = vpop.eup %2388  ;;  %v777_v11 = vmul.f32 %v2387_v59, %v2861_v48  ;;  %2157 = vmatprep.mubr.msk.f32.mxu0 %vm966_vm10, %v947_v53  ;;  %v913_v16 = vmul.f32 %v2786_v41, %v754_v21  ;;  %v761_v29 = vsel %vm759_vm14, %v760_v5, %v758_v61  ;;  %v768_v19 = vsel %vm766_vm13, %v767_v55, %v765_v50 }
  0xff   : > { %v770_v26 = vmul.f32 %v2389_v10, %v2863_v49  ;;  %v747_v57 = vsel %vm745_vm5, %v746_v15, %v744_v4  ;;  %v914_v37 = vmul.f32 %v2786_v41, %v761_v29  ;;  %v915_v46 = vmul.f32 %v2786_v41, %v768_v19 }
 0x100   : > { %v779_v58 = vsel %vm778_vm15, %v2861_v48, %v777_v11  ;;  %v912_v23 = vmul.f32 %v2786_v41, %v747_v57  ;;  %v936_v5 = vadd.f32 %v2812_v60, %v913_v16  ;;  %v950_v63 = vmax.f32 %v934_v0, 0.0 }
 0x101   : > { %v772_v30 = vsel %vm771_vm2, %v2863_v49, %v770_v26  ;;  %v782_v22 = vsel %vm780_vm0, %v781_v6, %v779_v58  ;;  %2158 = vmatmul.mubr.msk.f32.gmra.mrb[6].mxu0 %vm966_vm10, %v948_v54  ;;  %v937_v55 = vadd.f32 %v2812_v60, %v914_v37  ;;  %v938_v48 = vadd.f32 %v2812_v60, %v915_v46  ;;  %v1249_v49 = vld [vmem:[%s3404_s9 + $0x10] sm:$0x7] }
 0x102   : > { %v775_v31 = vsel %vm773_vm4, %v774_v13, %v772_v30  ;;  %2160 = vmatprep.mubr.msk.f32.mxu0 %vm966_vm10, %v949_v62  ;;  %v935_v32 = vadd.f32 %v2812_v60, %v912_v23  ;;  %v952_v24 = vmax.f32 %v936_v5, 0.0  ;;  %v917_v6 = vmul.f32 %v2786_v41, %v782_v22 }
 0x103   : > { %v916_v25 = vmul.f32 %v2786_v41, %v775_v31  ;;  %v953_v56 = vmax.f32 %v937_v55, 0.0  ;;  %vm1322_vm6 = vcmask 1042432   ;;  %v954_v13 = vmax.f32 %v938_v48, 0.0 }
 0x104   : > { %v951_v40 = vmax.f32 %v935_v32, 0.0  ;;  %v940_v34 = vadd.f32 %v2812_v60, %v917_v6  ;;  %vm1273_vm7 = vcmask 154624   ;;  %vm2508_vm8 = vmmov 0  }
 0x105   : > { %v939_v33 = vadd.f32 %v2812_v60, %v916_v25  ;;  %2161 = vmatmul.mubr.msk.f32.gmra.mrb[8].mxu0 %vm966_vm10, %v950_v63  ;;  %v1511_v60 = vld [vmem:[%s3407_s12 + $0x8] sm:$0xff] }
 0x106   : > { %2163 = vmatprep.mubr.msk.f32.mxu1 %vm966_vm10, %v951_v40  ;;  %v956_v20 = vmax.f32 %v940_v34, 0.0 }
 0x107   : > { %2164 = vmatmul.mubr.msk.f32.vlgmr.msra.gmra.mrb[0].mxu1 %vm966_vm10, %v952_v24  ;;  %v955_v41 = vmax.f32 %v939_v33, 0.0 }
 0x108   : > { %2166 = vmatprep.mubr.msk.f32.mxu1 %vm966_vm10, %v953_v56  ;;  %2276 = vmatpush3.bf16.msra.mxu1 %v2757_v12  ;;  %v1510_v12 = vld [vmem:[%s3407_s12] sm:$0xff] }
 0x109   : > { %2176 = vmatprep.subr.msk.mxu1 %vm1322_vm6, %v1249_v49  ;;  %v2277_v42 = vpack.c.bf16 %v1511_v60, %v1510_v12 }
 0x10b   : > { %2167 = vmatmul.mubr.msk.f32.gmra.mrb[2].mxu1 %vm966_vm10, %v954_v13  ;;  %2278 = vmatprep.subr.bf16.mxu0 %v2277_v42 }
 0x10c   : > { %2169 = vmatprep.mubr.msk.f32.mxu1 %vm966_vm10, %v955_v41  ;;  %2177 = vmatpush3.msk.msra.mxu1 %vm1322_vm6, %v1249_v49 }
 0x10d   : > { %2280 = vmatpush3.bf16.msra.mxu0 %v2277_v42 }
 0x10f   : > { %2170 = vmatmul.mubr.msk.f32.gmra.mrb[4].mxu1 %vm966_vm10, %v956_v20 }
 0x110   : > { %2178 = vmatprep.mubr.msk.f32.mxu1 %vm1273_vm7, %v2669_v2 }
 0x113   : > { %2179 = vmatmul.mubr.msk.f32.vlgmr.msra.gmra.mrb[6].mxu1 %vm1273_vm7, %v2678_v7 }
 0x114   : > { %2181 = vmatprep.mubr.msk.f32.mxu1 %vm1273_vm7, %v2666_v1 }
 0x117   : > { %2182 = vmatmul.mubr.msk.f32.gmra.mrb[8].mxu1 %vm1273_vm7, %v2672_v3 }
 0x118   : > { %2184 = vmatprep.mubr.msk.f32.mxu1 %vm1273_vm7, %v2684_v9 }
 0x11b   : > { %2185 = vmatmul.mubr.msk.f32.gmra.mrb[10].mxu1 %vm1273_vm7, %v2681_v8 }
 0x11c   : > { %2187 = vmatprep.mubr.msk.f32.mxu1 %vm1273_vm7, %v2693_v17 }
 0x11f   : > { %2188 = vmatmul.mubr.msk.f32.gmra.mrb[12].mxu1 %vm1273_vm7, %v2688_v14 }
 0x120   : > { %2190 = vmatprep.mubr.msk.f32.mxu1 %vm1273_vm7, %v2705_v28 }
 0x123   : > { %2191 = vmatmul.mubr.msk.f32.gmra.mrb[14].mxu1 %vm1273_vm7, %v2702_v27 }
 0x124   : > { %2193 = vmatprep.mubr.msk.f32.mxu1 %vm1273_vm7, %v2715_v36 }
 0x127   : > { %2194 = vmatmul.mubr.msk.f32.gmra.mrb[16].mxu1 %vm1273_vm7, %v2712_v35 }
 0x128   : > { %2196 = vmatprep.mubr.msk.f32.mxu1 %vm1273_vm7, %v2725_v44  ;;  %v3036_v44 = vld [vmem:[%s3402_s7] ss:$0 sm:$0xff] }
 0x12b   : > { %2197 = vmatmul.mubr.msk.f32.gmra.mrb[18].mxu1 %vm1273_vm7, %v2719_v39 }
 0x12c   : > { %2199 = vmatprep.mubr.msk.f32.mxu1 %vm1273_vm7, %v2735_v52 }
 0x12f   : > { %2200 = vmatmul.mubr.msk.f32.gmra.mrb[20].mxu1 %vm1273_vm7, %v2732_v51 }
 0x1c6   : > { %v2150_v52 = vpop.f32.mrb[0].mxu0 }
 0x1c7   : > { %v1087_v43 = vadd.f32 %v2150_v52, %v3036_v44  ;;  %v1081_v51 = vpop.f32.mrb[1].mxu0 }
 0x1c8   : > { %v1082_v45 = vadd.f32 %v3036_v44, %v1081_v51 }
 0x1c9   : > { %v1161_v18 = vmax.f32 %v1087_v43, 0.0 }
 0x1ca   : > { %v1160_v47 = vmax.f32 %v1082_v45, 0.0 }
 0x1cb   : > { %v1184_v59 = vmul.f32 %v3043_v38, %v1161_v18 }
 0x1cc   : > { %v2153_v50 = vpop.f32.mrb[2].mxu0  ;;  %v1183_v62 = vmul.f32 %v3043_v38, %v1160_v47 }
 0x1cd   : > { %v1097_v53 = vadd.f32 %v2153_v50, %v3036_v44  ;;  %v1091_v54 = vpop.f32.mrb[3].mxu0  ;;  %v1202_v4 = vsel %vm966_vm10, %v1184_v59, 0.0 }
 0x1ce   : > { %v1092_v61 = vadd.f32 %v3036_v44, %v1091_v54  ;;  %1203 = vadd.xlane.f32.xlu1 %v1202_v4  ;;  %v1199_v15 = vsel %vm966_vm10, %v1183_v62, 0.0 }
 0x1cf   : > { %v1163_v0 = vmax.f32 %v1097_v53, 0.0  ;;  %1200 = vadd.xlane.f32.xlu0 %v1199_v15 }
 0x1d0   : > { %v1162_v10 = vmax.f32 %v1092_v61, 0.0  ;;  %v2156_v11 = vpop.f32.mrb[4].mxu0 }
 0x1d1   : > { %v1107_v21 = vadd.f32 %v2156_v11, %v3036_v44  ;;  %v1101_v26 = vpop.f32.mrb[5].mxu0  ;;  %v1186_v16 = vmul.f32 %v3043_v38, %v1163_v0 }
 0x1d2   : > { %v1102_v29 = vadd.f32 %v3036_v44, %v1101_v26  ;;  %v1185_v19 = vmul.f32 %v3043_v38, %v1162_v10 }
 0x1d3   : > { %v1165_v58 = vmax.f32 %v1107_v21, 0.0  ;;  %v1208_v57 = vsel %vm966_vm10, %v1186_v16, 0.0 }
 0x1d4   : > { %v1164_v37 = vmax.f32 %v1102_v29, 0.0  ;;  %1209 = vadd.xlane.f32.xlu1 %v1208_v57  ;;  %v2159_v46 = vpop.f32.mrb[6].mxu0  ;;  %v1205_v30 = vsel %vm966_vm10, %v1185_v19, 0.0  ;;  %v1512_v57 = vld [vmem:[%s3407_s12 + $0x10] sm:$0xff] }
 0x1d5   : > { %v1117_v23 = vadd.f32 %v2159_v46, %v3036_v44  ;;  %1206 = vadd.xlane.f32.xlu0 %v1205_v30  ;;  %v1111_v5 = vpop.f32.mrb[7].mxu0  ;;  %v1188_v22 = vmul.f32 %v3043_v38, %v1165_v58 }
 0x1d6   : > { %v1112_v55 = vadd.f32 %v3036_v44, %v1111_v5  ;;  %v1187_v31 = vmul.f32 %v3043_v38, %v1164_v37  ;;  %v1513_v37 = vld [vmem:[%s3407_s12 + $0x18] sm:$0xff] }
 0x1d7   : > { %v1167_v32 = vmax.f32 %v1117_v23, 0.0  ;;  %v1214_v25 = vsel %vm966_vm10, %v1188_v22, 0.0  ;;  %v2281_v30 = vpack.c.bf16 %v1513_v37, %v1512_v57 }
 0x1d8   : > { %v1166_v63 = vmax.f32 %v1112_v55, 0.0  ;;  %1215 = vadd.xlane.f32.xlu1 %v1214_v25  ;;  %v2162_v24 = vpop.f32.mrb[8].mxu0  ;;  %v1211_v48 = vsel %vm966_vm10, %v1187_v31, 0.0 }
 0x1d9   : > { %v1127_v6 = vadd.f32 %v2162_v24, %v3036_v44  ;;  %1212 = vadd.xlane.f32.xlu0 %v1211_v48  ;;  %v1121_v40 = vpop.f32.mrb[9].mxu0  ;;  %v1190_v56 = vmul.f32 %v3043_v38, %v1167_v32  ;;  %2282 = vmatprep.subr.bf16.mxu0 %v2281_v30 }
 0x1da   : > { %v1122_v33 = vadd.f32 %v3036_v44, %v1121_v40  ;;  %v2165_v49 = vpop.f32.mrb[0].mxu1  ;;  %v1189_v13 = vmul.f32 %v3043_v38, %v1166_v63  ;;  %2284 = vmatpush3.bf16.msra.mxu0 %v2281_v30 }
 0x1db   : > { %v1169_v34 = vmax.f32 %v1127_v6, 0.0  ;;  %v1137_v41 = vadd.f32 %v2165_v49, %v3036_v44  ;;  %v1131_v20 = vpop.f32.mrb[1].mxu1  ;;  %v1220_v12 = vsel %vm966_vm10, %v1190_v56, 0.0 }
 0x1dc   : > { %v1168_v60 = vmax.f32 %v1122_v33, 0.0  ;;  %v1132_v42 = vadd.f32 %v3036_v44, %v1131_v20  ;;  %1221 = vadd.xlane.f32.xlu1 %v1220_v12  ;;  %v1217_v52 = vsel %vm966_vm10, %v1189_v13, 0.0 }
 0x1dd   : > { %v1171_v43 = vmax.f32 %v1137_v41, 0.0  ;;  %1218 = vadd.xlane.f32.xlu0 %v1217_v52  ;;  %v1192_v51 = vmul.f32 %v3043_v38, %v1169_v34  ;;  %v783_v52 = vmul.f32 %v2669_v2, %v2669_v2  ;;  %v787_v2 = vmul.f32 %v2684_v9, %v2684_v9 }
 0x1de   : > { %v1170_v45 = vmax.f32 %v1132_v42, 0.0  ;;  %v2168_v18 = vpop.f32.mrb[2].mxu1  ;;  %v1191_v47 = vmul.f32 %v3043_v38, %v1168_v60  ;;  %v784_v42 = vmul.f32 %v2678_v7, %v2678_v7  ;;  %v788_v7 = vmul.f32 %v2681_v8, %v2681_v8 }
 0x1df   : > { %v1147_v50 = vadd.f32 %v2168_v18, %v3036_v44  ;;  %v1141_v53 = vpop.f32.mrb[3].mxu1  ;;  %v1226_v54 = vsel %vm966_vm10, %v1192_v51, 0.0  ;;  %v1194_v59 = vmul.f32 %v3043_v38, %v1171_v43  ;;  %v786_v43 = vmul.f32 %v2672_v3, %v2672_v3 }
 0x1e0   : > { %v1142_v61 = vadd.f32 %v3036_v44, %v1141_v53  ;;  %1227 = vadd.xlane.f32.xlu1 %v1226_v54  ;;  %v1223_v62 = vsel %vm966_vm10, %v1191_v47, 0.0  ;;  %v1193_v0 = vmul.f32 %v3043_v38, %v1170_v45  ;;  %v785_v51 = vmul.f32 %v2666_v1, %v2666_v1 }
 0x1e1   : > { %v1173_v4 = vmax.f32 %v1147_v50, 0.0  ;;  %1224 = vadd.xlane.f32.xlu0 %v1223_v62  ;;  %v1232_v26 = vsel %vm966_vm10, %v1194_v59, 0.0  ;;  %v802_v45 = vsel %vm622_vm1, %v784_v42, 0.0  ;;  %v799_v18 = vsel %vm622_vm1, %v783_v52, 0.0 }
 0x1e2   : > { %v1172_v10 = vmax.f32 %v1142_v61, 0.0  ;;  %v2171_v11 = vpop.f32.mrb[4].mxu1  ;;  %v1229_v19 = vsel %vm966_vm10, %v1193_v0, 0.0  ;;  %v808_v47 = vsel %vm622_vm1, %v786_v43, 0.0  ;;  %v805_v50 = vsel %vm622_vm1, %v785_v51, 0.0 }
 0x1e3   : > { %v1157_v15 = vadd.f32 %v2171_v11, %v3036_v44  ;;  %v1151_v21 = vpop.f32.mrb[5].mxu1  ;;  %v1196_v16 = vmul.f32 %v3043_v38, %v1173_v4  ;;  %v814_v1 = vsel %vm622_vm1, %v788_v7, 0.0  ;;  %v811_v3 = vsel %vm622_vm1, %v787_v2, 0.0 }
 0x1e4   : > { %v1152_v29 = vadd.f32 %v3036_v44, %v1151_v21  ;;  %1233 = vadd.xlane.f32.xlu1 %v1232_v26  ;;  %v1195_v58 = vmul.f32 %v3043_v38, %v1172_v10  ;;  %v790_v53 = vmul.f32 %v2688_v14, %v2688_v14  ;;  %v789_v54 = vmul.f32 %v2693_v17, %v2693_v17  ;;  %v3177_v21 = vld [vmem:[%s3420_s23] ss:$0 sm:$0xff] }
 0x1e5   : > { %v1175_v46 = vmax.f32 %v1157_v15, 0.0  ;;  %1230 = vadd.xlane.f32.xlu0 %v1229_v19  ;;  %v1238_v44 = vsel %vm966_vm10, %v1196_v16, 0.0  ;;  %v792_v9 = vmul.f32 %v2702_v27, %v2702_v27  ;;  %v791_v61 = vmul.f32 %v2705_v28, %v2705_v28 }
 0x1e6   : > { %v1174_v23 = vmax.f32 %v1152_v29, 0.0  ;;  %v3091_v5 = vpop.f32.mrb[6].mxu1  ;;  %v1235_v31 = vsel %vm966_vm10, %v1195_v58, 0.0  ;;  %v820_v59 = vsel %vm622_vm1, %v790_v53, 0.0  ;;  %v817_v8 = vsel %vm622_vm1, %v789_v54, 0.0 }
 0x1e7   : > { %v1198_v22 = vmul.f32 %v3043_v38, %v1175_v46  ;;  %v3095_v55 = vpop.f32.mrb[7].mxu1  ;;  %v826_v62 = vsel %vm622_vm1, %v792_v9, 0.0  ;;  %v823_v14 = vsel %vm622_vm1, %v791_v61, 0.0  ;;  %v794_v17 = vmul.f32 %v2712_v35, %v2712_v35  ;;  %v3171_v35 = vld [vmem:[%s3405_s10] ss:$0 sm:$0xff] }
 0x1e8   : > { %1239 = vadd.xlane.f32.xlu1 %v1238_v44  ;;  %v1197_v32 = vmul.f32 %v3043_v38, %v1174_v23  ;;  %v793_v0 = vmul.f32 %v2715_v36, %v2715_v36  ;;  %v796_v28 = vmul.f32 %v2719_v39, %v2719_v39 }
 0x1e9   : > { %1236 = vadd.xlane.f32.xlu0 %v1235_v31  ;;  %v1244_v63 = vsel %vm966_vm10, %v1198_v22, 0.0  ;;  %v832_v4 = vsel %vm622_vm1, %v794_v17, 0.0 }
 0x1ea   : > { %v3099_v25 = vpop.f32.mrb[8].mxu1  ;;  %v1241_v48 = vsel %vm966_vm10, %v1197_v32, 0.0  ;;  %v829_v27 = vsel %vm622_vm1, %v793_v0, 0.0  ;;  %v838_v10 = vsel %vm622_vm1, %v796_v28, 0.0  ;;  %vm1521_vm10 = vcmask 261120  }
 0x1eb   : > { %v3102_v24 = vpop.f32.mrb[9].mxu1 }
 0x1ec   : > { %1245 = vadd.xlane.f32.xlu1 %v1244_v63 }
 0x1ed   : > { %1242 = vadd.xlane.f32.xlu0 %v1241_v48 }
 0x1ee   : > { %v3105_v6 = vpop.f32.mrb[10].mxu1 }
 0x1ef   : > { %v3107_v40 = vpop.f32.mrb[11].mxu1 }
 0x1f0   : > { %803 = vadd.xlane.f32.xlu1 %v802_v45 }
 0x1f1   : > { %800 = vadd.xlane.f32.xlu0 %v799_v18 }
 0x1f2   : > { %v3109_v56 = vpop.f32.mrb[12].mxu1 }
 0x1f3   : > { %v3111_v33 = vpop.f32.mrb[13].mxu1 }
 0x1f4   : > { %809 = vadd.xlane.f32.xlu1 %v808_v47 }
 0x1f5   : > { %806 = vadd.xlane.f32.xlu0 %v805_v50 }
 0x1f6   : > { %v3113_v38 = vpop.f32.mrb[14].mxu1 }
 0x1f7   : > { %v3115_v49 = vpop.f32.mrb[15].mxu1 }
 0x1f8   : > { %815 = vadd.xlane.f32.xlu1 %v814_v1 }
 0x1f9   : > { %812 = vadd.xlane.f32.xlu0 %v811_v3 }
 0x1fa   : > { %v3117_v13 = vpop.f32.mrb[16].mxu1 }
 0x1fb   : > { %v3119_v34 = vpop.f32.mrb[17].mxu1 }
 0x1fc   : > { %821 = vadd.xlane.f32.xlu1 %v820_v59 }
 0x1fd   : > { %818 = vadd.xlane.f32.xlu0 %v817_v8 }
 0x1fe   : > { %v3121_v41 = vpop.f32.mrb[18].mxu1 }
 0x1ff   : > { %v3123_v20 = vpop.f32.mrb[19].mxu1 }
 0x200   : > { %827 = vadd.xlane.f32.xlu1 %v826_v62 }
 0x201   : > { %824 = vadd.xlane.f32.xlu0 %v823_v14 }
 0x202   : > { %v3125_v12 = vpop.f32.mrb[20].mxu1 }
 0x203   : > { %v3127_v60 = vpop.f32.mrb[21].mxu1 }
 0x204   : > { %833 = vadd.xlane.f32.xlu1 %v832_v4 }
 0x205   : > { %830 = vadd.xlane.f32.xlu0 %v829_v27 }
 0x208   : > { %839 = vadd.xlane.f32.xlu1 %v838_v10 }
 0x25b   : > { %v1204_v36 = vpop.xlane.xlu1 %1203 }
 0x25c   : > { %v1258_v11 = vmul.f32 %v3171_v35, %v1204_v36  ;;  %v1201_v15 = vpop.xlane.xlu0 %1200 }
 0x25d   : > { %v1257_v39 = vmul.f32 %v3171_v35, %v1201_v15 }
 0x25e   : > { %v1398_v26 = vadd.f32 %v3091_v5, %v1258_v11 }
 0x25f   : > { %v1393_v16 = vadd.f32 %v3095_v55, %v1257_v39 }
 0x260   : > { %v1479_v19 = vadd.f32 %v3177_v21, %v1398_v26 }
 0x261   : > { %v1210_v29 = vpop.xlane.xlu1 %1209  ;;  %v1478_v37 = vadd.f32 %v3177_v21, %v1393_v16 }
 0x262   : > { %v1260_v58 = vmul.f32 %v3171_v35, %v1210_v29  ;;  %v1207_v57 = vpop.xlane.xlu0 %1206  ;;  %v1495_v5 = vmax.f32 %v1479_v19, 0.0 }
 0x263   : > { %v1259_v46 = vmul.f32 %v3171_v35, %v1207_v57  ;;  %v1494_v23 = vmax.f32 %v1478_v37, 0.0 }
 0x264   : > { %v1408_v30 = vadd.f32 %v3099_v25, %v1260_v58 }
 0x265   : > { %v1403_v44 = vadd.f32 %v3102_v24, %v1259_v46  ;;  %v1216_v22 = vpop.xlane.xlu1 %1215  ;;  %2210 = vmatprep.mubr.msk.f32.mxu0 %vm1521_vm10, %v1494_v23 }
 0x266   : > { %v1481_v55 = vadd.f32 %v3177_v21, %v1408_v30  ;;  %v1262_v31 = vmul.f32 %v3171_v35, %v1216_v22  ;;  %v1213_v32 = vpop.xlane.xlu0 %1212  ;;  %2211 = vmatmul.mubr.msk.f32.vlgmr.msra.gmra.mrb[10].mxu0 %vm1521_vm10, %v1495_v5 }
 0x267   : > { %v1480_v63 = vadd.f32 %v3177_v21, %v1403_v44  ;;  %v1261_v48 = vmul.f32 %v3171_v35, %v1213_v32  ;;  %v3248_v32 = vld [vmem:[%s2659_s19 + $0x78] sm:$0xff] }
 0x268   : > { %v1418_v42 = vadd.f32 %v3105_v6, %v1262_v31  ;;  %v1497_v43 = vmax.f32 %v1481_v55, 0.0 }
 0x269   : > { %v1496_v25 = vmax.f32 %v1480_v63, 0.0  ;;  %v1413_v24 = vadd.f32 %v3107_v40, %v1261_v48  ;;  %v1222_v52 = vpop.xlane.xlu1 %1221 }
 0x26a   : > { %v1483_v51 = vadd.f32 %v3177_v21, %v1418_v42  ;;  %v1264_v45 = vmul.f32 %v3171_v35, %v1222_v52  ;;  %v1219_v18 = vpop.xlane.xlu0 %1218  ;;  %v3255_v42 = vld [vmem:[%s2659_s19 + $0x70] sm:$0xff]  ;;  %v3263_v52 = vld [vmem:[%s3408_s13] ss:$0 sm:$0xff] }
 0x26b   : > { %v1482_v47 = vadd.f32 %v3177_v21, %v1413_v24  ;;  %v1263_v50 = vmul.f32 %v3171_v35, %v1219_v18  ;;  %2213 = vmatprep.mubr.msk.f32.mxu0 %vm1521_vm10, %v1496_v25  ;;  %v797_v25 = vmul.f32 %v3255_v42, %v3255_v42 }
 0x26c   : > { %v1428_v6 = vadd.f32 %v3109_v56, %v1264_v45  ;;  %2214 = vmatmul.mubr.msk.f32.gmra.mrb[12].mxu0 %vm1521_vm10, %v1497_v43  ;;  %v1499_v1 = vmax.f32 %v1483_v51, 0.0 }
 0x26d   : > { %v1498_v7 = vmax.f32 %v1482_v47, 0.0  ;;  %v1423_v40 = vadd.f32 %v3111_v33, %v1263_v50  ;;  %v1228_v2 = vpop.xlane.xlu1 %1227  ;;  %v841_v24 = vsel %vm622_vm1, %v797_v25, 0.0  ;;  %v3270_v47 = vld [vmem:[%s3409_s14] ss:$0 sm:$0xff] }
 0x26e   : > { %v1485_v3 = vadd.f32 %v3177_v21, %v1428_v6  ;;  %v1266_v53 = vmul.f32 %v3171_v35, %v1228_v2  ;;  %v1225_v54 = vpop.xlane.xlu0 %1224 }
 0x26f   : > { %v1484_v59 = vadd.f32 %v3177_v21, %v1423_v40  ;;  %v1265_v8 = vmul.f32 %v3171_v35, %v1225_v54  ;;  %2216 = vmatprep.mubr.msk.f32.mxu0 %vm1521_vm10, %v1498_v7 }
 0x270   : > { %v1438_v56 = vadd.f32 %v3113_v38, %v1266_v53  ;;  %2217 = vmatmul.mubr.msk.f32.gmra.mrb[14].mxu0 %vm1521_vm10, %v1499_v1  ;;  %v1501_v62 = vmax.f32 %v1485_v3, 0.0 }
 0x271   : > { %v1500_v9 = vmax.f32 %v1484_v59, 0.0  ;;  %v1433_v33 = vadd.f32 %v3115_v49, %v1265_v8  ;;  %v1234_v61 = vpop.xlane.xlu1 %1233 }
 0x272   : > { %v1487_v14 = vadd.f32 %v3177_v21, %v1438_v56  ;;  %v1268_v17 = vmul.f32 %v3171_v35, %v1234_v61  ;;  %v1231_v0 = vpop.xlane.xlu0 %1230 }
 0x273   : > { %v1486_v4 = vadd.f32 %v3177_v21, %v1433_v33  ;;  %v1267_v27 = vmul.f32 %v3171_v35, %v1231_v0  ;;  %2219 = vmatprep.mubr.msk.f32.mxu0 %vm1521_vm10, %v1500_v9 }
 0x274   : > { %v1448_v38 = vadd.f32 %v3117_v13, %v1268_v17  ;;  %2220 = vmatmul.mubr.msk.f32.gmra.mrb[16].mxu0 %vm1521_vm10, %v1501_v62  ;;  %v1503_v36 = vmax.f32 %v1487_v14, 0.0 }
 0x275   : > { %v1502_v28 = vmax.f32 %v1486_v4, 0.0  ;;  %v1443_v49 = vadd.f32 %v3119_v34, %v1267_v27  ;;  %v1240_v10 = vpop.xlane.xlu1 %1239 }
 0x276   : > { %v1489_v11 = vadd.f32 %v3177_v21, %v1448_v38  ;;  %v1270_v15 = vmul.f32 %v3171_v35, %v1240_v10  ;;  %v1237_v39 = vpop.xlane.xlu0 %1236 }
 0x277   : > { %v1488_v26 = vadd.f32 %v3177_v21, %v1443_v49  ;;  %v1269_v16 = vmul.f32 %v3171_v35, %v1237_v39  ;;  %2222 = vmatprep.mubr.msk.f32.mxu0 %vm1521_vm10, %v1502_v28 }
 0x278   : > { %v1458_v13 = vadd.f32 %v3121_v41, %v1270_v15  ;;  %2223 = vmatmul.mubr.msk.f32.gmra.mrb[18].mxu0 %vm1521_vm10, %v1503_v36  ;;  %v1505_v58 = vmax.f32 %v1489_v11, 0.0 }
 0x279   : > { %v1504_v29 = vmax.f32 %v1488_v26, 0.0  ;;  %v1453_v34 = vadd.f32 %v3123_v20, %v1269_v16  ;;  %v1246_v19 = vpop.xlane.xlu1 %1245 }
 0x27a   : > { %v1491_v57 = vadd.f32 %v3177_v21, %v1458_v13  ;;  %v1272_v37 = vmul.f32 %v3171_v35, %v1246_v19  ;;  %v1243_v46 = vpop.xlane.xlu0 %1242 }
 0x27b   : > { %v1490_v30 = vadd.f32 %v3177_v21, %v1453_v34  ;;  %v1271_v23 = vmul.f32 %v3171_v35, %v1243_v46  ;;  %2225 = vmatprep.mubr.msk.f32.mxu0 %vm1521_vm10, %v1504_v29 }
 0x27c   : > { %v1468_v41 = vadd.f32 %v3125_v12, %v1272_v37  ;;  %2226 = vmatmul.mubr.msk.f32.gmra.mrb[20].mxu0 %vm1521_vm10, %v1505_v58  ;;  %v1507_v22 = vmax.f32 %v1491_v57, 0.0  ;;  %v3243_v12 = vld [vmem:[%s2659_s19 + $0x60] sm:$0xff] }
 0x27d   : > { %v1506_v20 = vmax.f32 %v1490_v30, 0.0  ;;  %v1463_v44 = vadd.f32 %v3127_v60, %v1271_v23  ;;  %v795_v60 = vmul.f32 %v3243_v12, %v3243_v12 }
 0x27e   : > { %v1493_v5 = vadd.f32 %v3177_v21, %v1468_v41 }
 0x27f   : > { %v1492_v55 = vadd.f32 %v3177_v21, %v1463_v44  ;;  %2228 = vmatprep.mubr.msk.f32.mxu0 %vm1521_vm10, %v1506_v20  ;;  %v798_v21 = vmul.f32 %v3248_v32, %v3248_v32  ;;  %v835_v63 = vsel %vm622_vm1, %v795_v60, 0.0 }
 0x280   : > { %2229 = vmatmul.mubr.msk.f32.gmra.mrb[22].mxu0 %vm1521_vm10, %v1507_v22  ;;  %v1509_v31 = vmax.f32 %v1493_v5, 0.0  ;;  %836 = vadd.xlane.f32.xlu0 %v835_v63 }
 0x281   : > { %v1508_v35 = vmax.f32 %v1492_v55, 0.0  ;;  %v844_v48 = vsel %vm622_vm1, %v798_v21, 0.0 }
 0x282   : > { %845 = vadd.xlane.f32.xlu1 %v844_v48 }
 0x283   : > { %2231 = vmatprep.mubr.msk.f32.mxu0 %vm1521_vm10, %v1508_v35 }
 0x284   : > { %2232 = vmatmul.mubr.msk.f32.gmra.mrb[24].mxu0 %vm1521_vm10, %v1509_v31  ;;  %842 = vadd.xlane.f32.xlu0 %v841_v24 }
 0x339   : > { %v2212_v43 = vpop.f32.mrb[10].mxu0 }
 0x33a   : > { %v1642_v51 = vadd.f32 %v2212_v43, %v3263_v52  ;;  %v1636_v45 = vpop.f32.mrb[11].mxu0 }
 0x33b   : > { %v1637_v18 = vadd.f32 %v3263_v52, %v1636_v45 }
 0x33c   : > { %v1716_v50 = vmax.f32 %v1642_v51, 0.0 }
 0x33d   : > { %v1715_v6 = vmax.f32 %v1637_v18, 0.0 }
 0x33e   : > { %v1739_v1 = vmul.f32 %v3270_v47, %v1716_v50 }
 0x33f   : > { %v2215_v7 = vpop.f32.mrb[12].mxu0  ;;  %v1738_v53 = vmul.f32 %v3270_v47, %v1715_v6 }
 0x340   : > { %v1652_v40 = vadd.f32 %v2215_v7, %v3263_v52  ;;  %v1646_v2 = vpop.f32.mrb[13].mxu0  ;;  %v1757_v59 = vsel %vm1521_vm10, %v1739_v1, 0.0 }
 0x341   : > { %v1647_v3 = vadd.f32 %v3263_v52, %v1646_v2  ;;  %1758 = vadd.xlane.f32.xlu1 %v1757_v59  ;;  %v1754_v9 = vsel %vm1521_vm10, %v1738_v53, 0.0 }
 0x342   : > { %v1718_v54 = vmax.f32 %v1652_v40, 0.0  ;;  %1755 = vadd.xlane.f32.xlu0 %v1754_v9 }
 0x343   : > { %v1717_v8 = vmax.f32 %v1647_v3, 0.0  ;;  %v2218_v56 = vpop.f32.mrb[14].mxu0 }
 0x344   : > { %v1662_v33 = vadd.f32 %v2218_v56, %v3263_v52  ;;  %v1656_v61 = vpop.f32.mrb[15].mxu0  ;;  %v1741_v62 = vmul.f32 %v3270_v47, %v1718_v54 }
 0x345   : > { %v1657_v14 = vadd.f32 %v3263_v52, %v1656_v61  ;;  %v1740_v17 = vmul.f32 %v3270_v47, %v1717_v8 }
 0x346   : > { %v1720_v0 = vmax.f32 %v1662_v33, 0.0  ;;  %v1763_v4 = vsel %vm1521_vm10, %v1741_v62, 0.0  ;;  %v2507_v33 = vmov 0.0|0.0  }
 0x347   : > { %v1719_v27 = vmax.f32 %v1657_v14, 0.0  ;;  %1764 = vadd.xlane.f32.xlu1 %v1763_v4  ;;  %v2221_v38 = vpop.f32.mrb[16].mxu0  ;;  %v1760_v28 = vsel %vm1521_vm10, %v1740_v17, 0.0  ;;  %2285 = vmatprep.subr.bf16.mxu1 %v2507_v33  ;;  %v2509_v17 = vmov 0.0   ;;  %v801_v4 = vpop.xlane.xlu0 %800 }
 0x348   : > { %v1672_v49 = vadd.f32 %v2221_v38, %v3263_v52  ;;  %1761 = vadd.xlane.f32.xlu0 %v1760_v28  ;;  %v1666_v10 = vpop.f32.mrb[17].mxu0  ;;  %v1743_v36 = vmul.f32 %v3270_v47, %v1720_v0  ;;  %2266 = vmatprep.mubr.msk.f32.mxu1 %vm2508_vm8, %v2509_v17  ;;  %v804_v0 = vpop.xlane.xlu1 %803  ;;  %v2429_v17 = vld [vmem:[%s2659_s19 + $0x28] sm:$0xff] }
 0x349   : > { %v1667_v11 = vadd.f32 %v3263_v52, %v1666_v10  ;;  %v1742_v15 = vmul.f32 %v3270_v47, %v1719_v27 }
 0x34a   : > { %v1722_v39 = vmax.f32 %v1672_v49, 0.0  ;;  %v1769_v26 = vsel %vm1521_vm10, %v1743_v36, 0.0 }
 0x34b   : > { %v1721_v16 = vmax.f32 %v1667_v11, 0.0  ;;  %1770 = vadd.xlane.f32.xlu1 %v1769_v26  ;;  %v2224_v13 = vpop.f32.mrb[18].mxu0  ;;  %v1766_v29 = vsel %vm1521_vm10, %v1742_v15, 0.0  ;;  %v807_v38 = vpop.xlane.xlu0 %806  ;;  %v848_v26 = vmax.f32 %v804_v0, 1e-24 }
 0x34c   : > { %v1682_v34 = vadd.f32 %v2224_v13, %v3263_v52  ;;  %1767 = vadd.xlane.f32.xlu0 %v1766_v29  ;;  %v1676_v19 = vpop.f32.mrb[19].mxu0  ;;  %v1745_v58 = vmul.f32 %v3270_v47, %v1722_v39  ;;  %v810_v27 = vpop.xlane.xlu1 %809 }
 0x34d   : > { %v1677_v57 = vadd.f32 %v3263_v52, %v1676_v19  ;;  %v1744_v37 = vmul.f32 %v3270_v47, %v1721_v16  ;;  %v847_v16 = vmax.f32 %v801_v4, 1e-24  ;;  %2390 = vrsqrt.f32 %v848_v26 }
 0x34e   : > { %v1724_v46 = vmax.f32 %v1682_v34, 0.0  ;;  %v1775_v30 = vsel %vm1521_vm10, %v1745_v58, 0.0  ;;  %v850_v13 = vmax.f32 %v810_v27, 1e-24  ;;  %v849_v34 = vmax.f32 %v807_v38, 1e-24 }
 0x34f   : > { %v1723_v23 = vmax.f32 %v1677_v57, 0.0  ;;  %1776 = vadd.xlane.f32.xlu1 %v1775_v30  ;;  %v2227_v41 = vpop.f32.mrb[20].mxu0  ;;  %v1772_v20 = vsel %vm1521_vm10, %v1744_v37, 0.0  ;;  %v813_v49 = vpop.xlane.xlu0 %812  ;;  %2392 = vrsqrt.f32 %v847_v16 }
 0x350   : > { %v1692_v44 = vadd.f32 %v2227_v41, %v3263_v52  ;;  %1773 = vadd.xlane.f32.xlu0 %v1772_v20  ;;  %v1686_v22 = vpop.f32.mrb[21].mxu0  ;;  %v1747_v5 = vmul.f32 %v3270_v47, %v1724_v46  ;;  %v816_v28 = vpop.xlane.xlu1 %815  ;;  %2394 = vrsqrt.f32 %v850_v13  ;;  %v851_v57 = vmax.f32 %v813_v49, 1e-24  ;;  %v2430_v49 = vld [vmem:[%s2659_s19 + $0x20] sm:$0xff]  ;;  %v2431_v13 = vld [vmem:[%s2659_s19 + $0x38] sm:$0xff] }
 0x351   : > { %v1687_v55 = vadd.f32 %v3263_v52, %v1686_v22  ;;  %v1746_v35 = vmul.f32 %v3270_v47, %v1723_v23  ;;  %v852_v58 = vmax.f32 %v816_v28, 1e-24  ;;  %2396 = vrsqrt.f32 %v849_v34 }
 0x352   : > { %v1726_v31 = vmax.f32 %v1692_v44, 0.0  ;;  %v1781_v60 = vsel %vm1521_vm10, %v1747_v5, 0.0  ;;  %v3327_v20 = vstv %s1802_s21 }
 0x353   : > { %v1725_v21 = vmax.f32 %v1687_v55, 0.0  ;;  %1782 = vadd.xlane.f32.xlu1 %v1781_v60  ;;  %v2230_v63 = vpop.f32.mrb[22].mxu0  ;;  %v1778_v48 = vsel %vm1521_vm10, %v1746_v35, 0.0  ;;  %v819_v36 = vpop.xlane.xlu0 %818  ;;  %2398 = vrsqrt.f32 %v852_v58  ;;  %v2425_v35 = vld [vmem:[%s2659_s19 + $0x8] sm:$0xff] }
 0x354   : > { %v1702_v25 = vadd.f32 %v2230_v63, %v3263_v52  ;;  %1779 = vadd.xlane.f32.xlu0 %v1778_v48  ;;  %v1696_v24 = vpop.f32.mrb[23].mxu0  ;;  %v1749_v43 = vmul.f32 %v3270_v47, %v1726_v31  ;;  %v822_v10 = vpop.xlane.xlu1 %821  ;;  %2400 = vrsqrt.f32 %v851_v57  ;;  %v853_v23 = vmax.f32 %v819_v36, 1e-24  ;;  %v2426_v48 = vld [vmem:[%s2659_s19] sm:$0xff] }
 0x355   : > { %v1697_v51 = vadd.f32 %v3263_v52, %v1696_v24  ;;  %v1748_v45 = vmul.f32 %v3270_v47, %v1725_v21  ;;  %v854_v30 = vmax.f32 %v822_v10, 1e-24 }
 0x356   : > { %v1728_v18 = vmax.f32 %v1702_v25, 0.0  ;;  %v1787_v50 = vsel %vm1521_vm10, %v1749_v43, 0.0 }
 0x357   : > { %v1727_v6 = vmax.f32 %v1697_v51, 0.0  ;;  %1788 = vadd.xlane.f32.xlu1 %v1787_v50  ;;  %v2233_v7 = vpop.f32.mrb[24].mxu0  ;;  %v1784_v40 = vsel %vm1521_vm10, %v1748_v45, 0.0  ;;  %v825_v15 = vpop.xlane.xlu0 %824  ;;  %2402 = vrsqrt.f32 %v854_v30  ;;  %v2432_v30 = vld [vmem:[%s2659_s19 + $0x30] sm:$0xff] }
 0x358   : > { %v1712_v2 = vadd.f32 %v2233_v7, %v3263_v52  ;;  %1785 = vadd.xlane.f32.xlu0 %v1784_v40  ;;  %v1706_v1 = vpop.f32.mrb[25].mxu0  ;;  %v1751_v3 = vmul.f32 %v3270_v47, %v1728_v18  ;;  %v828_v11 = vpop.xlane.xlu1 %827  ;;  %2404 = vrsqrt.f32 %v853_v23  ;;  %v855_v55 = vmax.f32 %v825_v15, 1e-24  ;;  %v2427_v7 = vld [vmem:[%s2659_s19 + $0x18] sm:$0xff] }
 0x359   : > { %v1707_v53 = vadd.f32 %v3263_v52, %v1706_v1  ;;  %v1750_v54 = vmul.f32 %v3270_v47, %v1727_v6  ;;  %v2391_v41 = vpop.eup %2390  ;;  %v856_v22 = vmax.f32 %v828_v11, 1e-24 }
 0x35a   : > { %v1730_v59 = vmax.f32 %v1712_v2, 0.0  ;;  %v1793_v8 = vsel %vm1521_vm10, %v1751_v3, 0.0  ;;  %v2393_v44 = vpop.eup %2392  ;;  %v880_v31 = vmul.f32 %v2425_v35, %v2391_v41 }
 0x35b   : > { %v1729_v56 = vmax.f32 %v1707_v53, 0.0  ;;  %1794 = vadd.xlane.f32.xlu1 %v1793_v8  ;;  %v1790_v9 = vsel %vm1521_vm10, %v1750_v54, 0.0  ;;  %v831_v39 = vpop.xlane.xlu0 %830  ;;  %v2395_v63 = vpop.eup %2394  ;;  %v879_v25 = vmul.f32 %v2426_v48, %v2393_v44  ;;  %2406 = vrsqrt.f32 %v856_v22  ;;  %v2428_v54 = vld [vmem:[%s2659_s19 + $0x10] sm:$0xff] }
 0x35c   : > { %1791 = vadd.xlane.f32.xlu0 %v1790_v9  ;;  %v1753_v61 = vmul.f32 %v3270_v47, %v1730_v59  ;;  %v2397_v43 = vpop.eup %2396  ;;  %2408 = vrsqrt.f32 %v855_v55  ;;  %v857_v6 = vmax.f32 %v831_v39, 1e-24  ;;  %v882_v40 = vmul.f32 %v2427_v7, %v2395_v63  ;;  %v2434_v63 = vld [vmem:[%s2659_s19 + $0x40] sm:$0xff] }
 0x35d   : > { %v1752_v62 = vmul.f32 %v3270_v47, %v1729_v56  ;;  %v834_v47 = vpop.xlane.xlu1 %833  ;;  %v2399_v3 = vpop.eup %2398  ;;  %v881_v59 = vmul.f32 %v2428_v54, %v2397_v43 }
 0x35e   : > { %v1799_v14 = vsel %vm1521_vm10, %v1753_v61, 0.0  ;;  %v858_v45 = vmax.f32 %v834_v47, 1e-24  ;;  %v2401_v56 = vpop.eup %2400  ;;  %v884_v0 = vmul.f32 %v2429_v17, %v2399_v3  ;;  %v2436_v3 = vld [vmem:[%s2659_s19 + $0x50] sm:$0xff] }
 0x35f   : > { %1800 = vadd.xlane.f32.xlu1 %v1799_v14  ;;  %v1796_v52 = vsel %vm1521_vm10, %v1752_v62, 0.0  ;;  %v3321_v19 = vpop.xlane.xlu0 %836  ;;  %v883_v10 = vmul.f32 %v2430_v49, %v2401_v56 }
 0x360   : > { %1797 = vadd.xlane.f32.xlu0 %v1796_v52  ;;  %2410 = vrsqrt.f32 %v858_v45  ;;  %v859_v52 = vmax.f32 %v3321_v19, 1e-24 }
 0x361   : > { %v3319_v29 = vpop.xlane.xlu1 %839  ;;  %2412 = vrsqrt.f32 %v857_v6  ;;  %v2403_v38 = vpop.eup %2402 }
 0x362   : > { %v860_v61 = vmax.f32 %v3319_v29, 1e-24  ;;  %v2405_v11 = vpop.eup %2404  ;;  %v886_v29 = vmul.f32 %v2431_v13, %v2403_v38 }
 0x363   : > { %v3325_v46 = vpop.xlane.xlu0 %842  ;;  %v885_v23 = vmul.f32 %v2432_v30, %v2405_v11 }
 0x364   : > { %2414 = vrsqrt.f32 %v860_v61  ;;  %v861_v16 = vmax.f32 %v3325_v46, 1e-24 }
 0x365   : > { %v3323_v37 = vpop.xlane.xlu1 %845  ;;  %2416 = vrsqrt.f32 %v859_v52  ;;  %v2407_v58 = vpop.eup %2406 }
 0x366   : > { %v862_v47 = vmax.f32 %v3323_v37, 1e-24  ;;  %v2409_v41 = vpop.eup %2408 }
 0x367   : > { %v887_v48 = vmul.f32 %v2434_v63, %v2409_v41 }
 0x368   : > { %2418 = vrsqrt.f32 %v862_v47 }
 0x369   : > { %2420 = vrsqrt.f32 %v861_v16 }
 0x3ce   : > { %v1759_v5 = vpop.xlane.xlu1 %1758 }
 0x3cf   : > { %v1805_v60 = vadd.f32 %v3327_v20, %v1759_v5  ;;  %v1756_v21 = vpop.xlane.xlu0 %1755  ;;  %v2433_v5 = vld [vmem:[%s2659_s19 + $0x48] sm:$0xff] }
 0x3d0   : > { %v1804_v24 = vadd.f32 %v3327_v20, %v1756_v21  ;;  %v888_v55 = vmul.f32 %v2433_v5, %v2407_v58 }
 0x3d1   : > { %v1821_v51 = vmul.f32 %v1805_v60, %v880_v31  ;;  %v2411_v60 = vpop.eup %2410 }
 0x3d2   : > { %v1820_v18 = vmul.f32 %v1804_v24, %v879_v25  ;;  %v2413_v24 = vpop.eup %2412 }
 0x3d4   : > { %v1765_v50 = vpop.xlane.xlu1 %1764  ;;  %v2286_v53 = vpack.c.bf16 %v1821_v51, %v1820_v18  ;;  %v1840_v18 = vlaneseq }
 0x3d5   : > { %v1807_v2 = vadd.f32 %v3327_v20, %v1765_v50  ;;  %v1762_v1 = vpop.xlane.xlu0 %1761  ;;  %v2435_v50 = vld [vmem:[%s2659_s19 + $0x58] sm:$0xff] }
 0x3d6   : > { %v1806_v8 = vadd.f32 %v3327_v20, %v1762_v1  ;;  %2287 = vmatpush3.bf16.msra.mxu1 %v2286_v53  ;;  %v890_v6 = vmul.f32 %v2435_v50, %v2411_v60  ;;  %v889_v53 = vmul.f32 %v2436_v3, %v2413_v24  ;;  %v1841_v61 = vshrl.u32 %v1840_v18, 7 }
 0x3d7   : > { %v1823_v9 = vmul.f32 %v1807_v2, %v882_v40  ;;  %2288 = vmatprep.subr.bf16.mxu1 %v2507_v33  ;;  %v2415_v2 = vpop.eup %2414 }
 0x3d8   : > { %v1822_v62 = vmul.f32 %v1806_v8, %v881_v59  ;;  %v1771_v14 = vpop.xlane.xlu1 %1770  ;;  %v2417_v59 = vpop.eup %2416 }
 0x3d9   : > { %v1809_v4 = vadd.f32 %v3327_v20, %v1771_v14  ;;  %v1768_v27 = vpop.xlane.xlu0 %1767 }
 0x3da   : > { %v2289_v28 = vpack.c.bf16 %v1823_v9, %v1822_v62  ;;  %v1808_v36 = vadd.f32 %v3327_v20, %v1768_v27  ;;  %v2437_v62 = vld [vmem:[%s2659_s19 + $0x68] sm:$0xff]  ;;  %v2419_v27 = vpop.eup %2418 }
 0x3db   : > { %v1825_v15 = vmul.f32 %v1809_v4, %v884_v0  ;;  %v892_v14 = vmul.f32 %v2437_v62, %v2415_v2  ;;  %v1836_v0 = vld [vmem:[%s554_s22] sm:$0x1]  ;;  %v1838_v4 = vstv %s2065_s26 }
 0x3dc   : > { %v1824_v39 = vmul.f32 %v1808_v36, %v883_v10  ;;  %v1777_v26 = vpop.xlane.xlu1 %1776  ;;  %2290 = vmatpush3.bf16.msra.mxu1 %v2289_v28  ;;  %v891_v28 = vmul.f32 %v3243_v12, %v2417_v59  ;;  %v2421_v10 = vpop.eup %2420  ;;  %v1839_v47 = vsub.s32 %v1836_v0, %v1838_v4 }
 0x3dd   : > { %v1811_v34 = vadd.f32 %v3327_v20, %v1777_v26  ;;  %v1774_v19 = vpop.xlane.xlu0 %1773  ;;  %2291 = vmatprep.subr.bf16.mxu1 %v2507_v33  ;;  %v894_v26 = vmul.f32 %v3248_v32, %v2419_v27  ;;  %v893_v12 = vmul.f32 %v3255_v42, %v2421_v10  ;;  %v2510_v32 = vmov 1.0  }
 0x3de   : > { %v2292_v57 = vpack.c.bf16 %v1825_v15, %v1824_v39  ;;  %v1810_v37 = vadd.f32 %v3327_v20, %v1774_v19  ;;  %v1844_v39 = vsub.s32 0, %v1841_v61 }
 0x3df   : > { %v1827_v44 = vmul.f32 %v1811_v34, %v886_v29 }
 0x3e0   : > { %v1826_v22 = vmul.f32 %v1810_v37, %v885_v23  ;;  %v1783_v46 = vpop.xlane.xlu1 %1782  ;;  %2293 = vmatpush3.bf16.msra.mxu1 %v2292_v57  ;;  %v1845_v57 = vrot.slane %v1839_v47, %v1844_v39  ;;  %v1849_v23 = vld [vmem:[%s2648_s30] sm:$0xff] }
 0x3e1   : > { %v1813_v35 = vadd.f32 %v3327_v20, %v1783_v46  ;;  %v1780_v31 = vpop.xlane.xlu0 %1779  ;;  %2294 = vmatprep.subr.bf16.mxu1 %v2507_v33 }
 0x3e2   : > { %v2295_v21 = vpack.c.bf16 %v1827_v44, %v1826_v22  ;;  %v1812_v25 = vadd.f32 %v3327_v20, %v1780_v31  ;;  %vm1846_vm9 = vcmp.eq.s32.totalorder %v1841_v61, %v1845_v57 }
 0x3e3   : > { %v1829_v43 = vmul.f32 %v1813_v35, %v888_v55 }
 0x3e4   : > { %v1828_v51 = vmul.f32 %v1812_v25, %v887_v48  ;;  %v1789_v45 = vpop.xlane.xlu1 %1788  ;;  %2296 = vmatpush3.bf16.msra.mxu1 %v2295_v21 }
 0x3e5   : > { %v1815_v7 = vadd.f32 %v3327_v20, %v1789_v45  ;;  %v1786_v40 = vpop.xlane.xlu0 %1785  ;;  %2297 = vmatprep.subr.bf16.mxu1 %v2507_v33 }
 0x3e6   : > { %v2298_v1 = vpack.c.bf16 %v1829_v43, %v1828_v51  ;;  %v1814_v54 = vadd.f32 %v3327_v20, %v1786_v40 }
 0x3e7   : > { %v1831_v8 = vmul.f32 %v1815_v7, %v890_v6 }
 0x3e8   : > { %v1830_v56 = vmul.f32 %v1814_v54, %v889_v53  ;;  %v1795_v9 = vpop.xlane.xlu1 %1794  ;;  %2299 = vmatpush3.bf16.msra.mxu1 %v2298_v1 }
 0x3e9   : > { %v1817_v52 = vadd.f32 %v3327_v20, %v1795_v9  ;;  %v1792_v17 = vpop.xlane.xlu0 %1791  ;;  %2300 = vmatprep.subr.bf16.mxu1 %v2507_v33 }
 0x3ea   : > { %v2301_v38 = vpack.c.bf16 %v1831_v8, %v1830_v56  ;;  %v1816_v49 = vadd.f32 %v3327_v20, %v1792_v17 }
 0x3eb   : > { %v1833_v36 = vmul.f32 %v1817_v52, %v892_v14 }
 0x3ec   : > { %v1832_v11 = vmul.f32 %v1816_v49, %v891_v28  ;;  %v1801_v15 = vpop.xlane.xlu1 %1800  ;;  %2302 = vmatpush3.bf16.msra.mxu1 %v2301_v38 }
 0x3ed   : > { %v1819_v16 = vadd.f32 %v3327_v20, %v1801_v15  ;;  %v1798_v13 = vpop.xlane.xlu0 %1797  ;;  %2303 = vmatprep.subr.bf16.mxu1 %v2507_v33 }
 0x3ee   : > { %v2304_v29 = vpack.c.bf16 %v1833_v36, %v1832_v11  ;;  %v1818_v34 = vadd.f32 %v3327_v20, %v1798_v13 }
 0x3ef   : > { %v1835_v19 = vmul.f32 %v1819_v16, %v894_v26 }
 0x3f0   : > { %v1834_v58 = vmul.f32 %v1818_v34, %v893_v12  ;;  %2305 = vmatpush3.bf16.msra.mxu1 %v2304_v29 }
 0x3f1   : > { %2306 = vmatprep.subr.bf16.mxu1 %v2507_v33 }
 0x3f2   : > { %v2307_v30 = vpack.c.bf16 %v1835_v19, %v1834_v58 }
 0x3f4   : > { %2308 = vmatpush3.bf16.msra.mxu1 %v2307_v30 }
 0x3f7   : > { %2267 = vmatmul.mubr.msk.f32.vlgmr.msra.gmra.mrb[22].mxu1 %vm1846_vm9, %v2510_v32 }
 0x4ca   : > { %v1916_v37 = vpop.f32.mrb[22].mxu1 }
 0x4cb   : > { %v1920_v41 = vadd.f32 %v1916_v37, %v1849_v23  ;;  %v2268_v44 = vpop.f32.mrb[23].mxu1 }
 0x4cd   : > { %1921 = vst.msk [vmem:[%s2648_s30] sm:$0xff] %vm622_vm1, %v1920_v41 }
 0x4ce PF: > { %s37_s20 = sadd.s32 1, %s2502_s20   ;;  %s3421_s18 = sld [smem:[#allocation7_spill]] }
 0x4cf   : > { %p34_p7 = scmp.ge.s32.totalorder %s37_s20, 8   ;;  %s3422_s19 = sld [smem:[#allocation8_spill]] }
 0x4d0   : > { %s3423_s27 = sld [smem:[#allocation9_spill]]  ;;  %s3424_s17 = smov %s2494_s11 }
 0x4d1   :  { %36 = sbr.rel (!%p34_p7) target bundleno = 35 (0x23), region = 117 }
 0x4d5   : > { %s3425_s11 = smov %s3422_s19 }
 0x4d6   : > { %s3426_s19 = smov %s3423_s27 }

</bundles_post_ra>
